<compile_context>
chip_gen: v6e
topology: v6e:2x2x1
jax: 0.10.0
libtpu: 0.0.40
codegen_flags: <defaults>
</compile_context>

<pallas_src>
import jax
import jax.numpy as jnp
from jax.experimental import pallas as pl
from jax.experimental.pallas import tpu as pltpu


_SMALL_N = 1 << 16               # below this, a fused XLA elementwise op beats kernel overhead
_LANE_WIDTHS = (512, 256, 128)   # lane-dense last dims (multiples of 128) to try, widest first


def _target_tile_bytes():
    # ~2 MiB/operand/buffer -> 3 operands x 2 buffers = 12 MiB live: fits v5e's 16 MiB default
    # scoped VMEM and is ~86% of roofline on v6e.  On v7x (3.2 TB/s HBM/TC) the fixed ~0.35 us
    # per-grid-step overhead is significant at 2 MiB, so bump to 4 MiB (24 MiB live, < 32 MiB
    # default scoped limit and well under the 64 MiB physical ceiling).
    try:
        kind = jax.devices()[0].device_kind.lower()
        if "v7" in kind:
            return 4 << 20
    except Exception:
        pass
    return 2 << 20


def _add_scale_kernel(alpha_ref, x1_ref, x2_ref, o_ref):
    # alpha_ref: (1,) f32 scalar in SMEM.  Compute in f32, cast the *result* (not the parameter).
    alpha = alpha_ref[0]
    x1 = x1_ref[...].astype(jnp.float32)
    x2 = x2_ref[...].astype(jnp.float32)
    o_ref[...] = (x1 + x2 * alpha).astype(o_ref.dtype)


def _reference_compute(x1, x2, alpha_scalar):
    # Plain-jnp path for tiny inputs / ragged tails (XLA fuses this at roofline).
    return (x1.astype(jnp.float32) + x2.astype(jnp.float32) * alpha_scalar).astype(x1.dtype)


def _pick_block_rows(rows, lane_width, itemsize):
    sub = 8 * max(1, 4 // itemsize)            # sublane packing: f32 -> 8, bf16 -> 16, int8 -> 32
    target = max(sub, (_target_tile_bytes() // (lane_width * itemsize)) // sub * sub)
    if rows > target:
        return target                          # ragged last block handled by Pallas
    if rows < 2 * sub:
        return rows                            # single full-extent block (layout-legal)
    # Guarantee >= 2 grid steps so dimension_semantics=("parallel",) can shard across both
    # TensorCores on v7x (harmless on v5e/v6e).
    half = -(-rows // 2)
    return -(-half // sub) * sub


def _add_scale_2d(x1_2d, x2_2d, alpha):
    rows, lane_width = x1_2d.shape
    itemsize = x1_2d.dtype.itemsize
    block_rows = _pick_block_rows(rows, lane_width, itemsize)
    grid = (pl.cdiv(rows, block_rows),)
    vmem_limit = 3 * 2 * block_rows * lane_width * itemsize + (2 << 20)   # 3 ops x 2 bufs + slack
    return pl.pallas_call(
        _add_scale_kernel,
        out_shape=jax.ShapeDtypeStruct((rows, lane_width), x1_2d.dtype),
        grid=grid,
        in_specs=[
            pl.BlockSpec(memory_space=pltpu.MemorySpace.SMEM),          # alpha (1,) f32 scalar
            pl.BlockSpec((block_rows, lane_width), lambda i: (i, 0)),   # input1 tile
            pl.BlockSpec((block_rows, lane_width), lambda i: (i, 0)),   # input2 tile
        ],
        out_specs=pl.BlockSpec((block_rows, lane_width), lambda i: (i, 0)),
        compiler_params=pltpu.CompilerParams(
            dimension_semantics=("parallel",),
            vmem_limit_bytes=vmem_limit,
        ),
    )(alpha, x1_2d, x2_2d)


def add_and_normalization(input1, input2, alpha):
    """input1 + input2 * alpha for identically-shaped arrays; alpha is a scalar f32 parameter."""
    assert input1.shape == input2.shape
    assert input1.dtype == input2.dtype
    orig_shape = input1.shape
    n = input1.size
    alpha = jnp.asarray(alpha, jnp.float32).reshape((1,))

    # Tiny inputs: fixed pallas_call overhead dominates -> let XLA fuse it.
    if n < _SMALL_N:
        return _reference_compute(input1, input2, alpha[0])

    x1 = input1.reshape(-1)
    x2 = input2.reshape(-1)

    # Copy-free relayout: widest lane-dense width that divides n exactly (reshape = bitcast).
    for C in _LANE_WIDTHS:
        if n % C == 0:
            out = _add_scale_2d(x1.reshape(-1, C), x2.reshape(-1, C), alpha)
            return out.reshape(orig_shape)

    # Total size not a multiple of 128: run the bulk through the kernel and finish the
    # <512-element tail with plain jnp (noise-level cost; no whole-array padding).
    C = _LANE_WIDTHS[0]
    n_main = (n // C) * C
    main = _add_scale_2d(x1[:n_main].reshape(-1, C), x2[:n_main].reshape(-1, C), alpha)
    tail = _reference_compute(x1[n_main:], x2[n_main:], alpha[0])
    return jnp.concatenate([main.reshape(-1), tail]).reshape(orig_shape)


if __name__ == "__main__":
    key = jax.random.PRNGKey(0)

    # Parameter init matches nn.Parameter(torch.Tensor([0]))
    alpha0 = jnp.zeros((1,), dtype=jnp.float32)
    alpha1 = jnp.asarray([0.37], dtype=jnp.float32)

    def check(shape, alpha, k):
        k1, k2 = jax.random.split(k)
        a = jax.random.normal(k1, shape, dtype=jnp.float32)
        b = jax.random.normal(k2, shape, dtype=jnp.float32)
        out = jax.block_until_ready(add_and_normalization(a, b, alpha))
        ref = a + b * jnp.asarray(alpha, jnp.float32).reshape(())
        assert out.shape == a.shape and out.dtype == a.dtype
        assert jnp.allclose(out, ref, atol=1e-6), f"mismatch vs reference for shape {shape}"

    keys = jax.random.split(key, 4)
    # (B, S, D) demo shape implied by the attention module: tiny -> fused-jnp fast path
    check((2, 8, 32), alpha0, keys[0])
    # kernel path, exact tiling, 2 parallel grid steps
    check((4, 256, 512), alpha1, keys[1])
    # kernel path, ragged last row-block (rows=1200, block_rows=1024) -- no padding, no trim
    check((4, 300, 512), alpha1, keys[2])
    # total size not a multiple of 128: kernel bulk + plain-jnp tail
    check((9, 100, 100), alpha1, keys[3])

    print("KERNEL_OK")
</pallas_src>

<mosaic_0001>
module attributes {stable_mosaic.version = 11 : i64} {
  func.func @_add_scale_kernel(%arg0: i32, %arg1: memref<1xf32, #tpu.memory_space<smem>>, %arg2: memref<512x512xf32, #tpu.memory_space<vmem>>, %arg3: memref<512x512xf32, #tpu.memory_space<vmem>>, %arg4: memref<512x512xf32, #tpu.memory_space<vmem>>) attributes {dimension_semantics = [#tpu.dimension_semantics<parallel>], iteration_bounds = array<i64: 2>, scalar_prefetch = 0 : i64, scratch_operands = 0 : i64, tpu.core_type = #tpu.core_type<tc>, window_params = [{transform_indices = @transform_0, window_bounds = array<i64: 1>}, {transform_indices = @transform_1, window_bounds = array<i64: 512, 512>}, {transform_indices = @transform_2, window_bounds = array<i64: 512, 512>}, {transform_indices = @transform_3, window_bounds = array<i64: 512, 512>}]} {
    %c0 = arith.constant 0 : index
    %0 = memref.load %arg1[%c0] : memref<1xf32, #tpu.memory_space<smem>>
    %c0_0 = arith.constant 0 : index
    %c0_1 = arith.constant 0 : index
    %1 = vector.load %arg2[%c0_0, %c0_1] : memref<512x512xf32, #tpu.memory_space<vmem>>, vector<512x512xf32>
    %c0_2 = arith.constant 0 : index
    %c0_3 = arith.constant 0 : index
    %2 = vector.load %arg3[%c0_2, %c0_3] : memref<512x512xf32, #tpu.memory_space<vmem>>, vector<512x512xf32>
    %3 = vector.broadcast %0 : f32 to vector<512x512xf32>
    %4 = arith.mulf %2, %3 : vector<512x512xf32>
    %5 = arith.addf %1, %4 : vector<512x512xf32>
    %c0_4 = arith.constant 0 : index
    %c0_5 = arith.constant 0 : index
    %6 = vector.load %arg4[%c0_4, %c0_5] : memref<512x512xf32, #tpu.memory_space<vmem>>, vector<512x512xf32>
    tpu.vector_store %arg4[%c0_4, %c0_5], %5 {strides = array<i32>} : memref<512x512xf32, #tpu.memory_space<vmem>>, vector<512x512xf32>,
    return
  }
  func.func @transform_0(%arg0: i32) -> i32 {
    %c0_i32 = arith.constant 0 : i32
    %c0_i32_0 = arith.constant 0 : i32
    return %c0_i32 : i32
  }
  func.func @transform_1(%arg0: i32) -> (i32, i32) {
    %c0_i32 = arith.constant 0 : i32
    %c0_i32_0 = arith.constant 0 : i32
    return %arg0, %c0_i32 : i32, i32
  }
  func.func @transform_2(%arg0: i32) -> (i32, i32) {
    %c0_i32 = arith.constant 0 : i32
    %c0_i32_0 = arith.constant 0 : i32
    return %arg0, %c0_i32 : i32, i32
  }
  func.func @transform_3(%arg0: i32) -> (i32, i32) {
    %c0_i32 = arith.constant 0 : i32
    %c0_i32_0 = arith.constant 0 : i32
    return %arg0, %c0_i32 : i32, i32
  }
}

</mosaic_0001>

<bundles_post_ra>
// kernel: tpu_custom_call.1
= control target key start
LH: loop header
LB: loop body
LE: loop exit
PB: predicated region body
PF: predicated region fallthrough
CT: control target
= control target key end

     0   :  { %s3122_s0 = inlined_call_operand.<no memory space> [shape: f32[1], index: 0, kind: input, shape index: {}]   ;;  %s3123_s1 = inlined_call_operand.hbm [shape: f32[1024,512], index: 1, kind: input, shape index: {}]   ;;  %s3124_s2 = inlined_call_operand.hbm [shape: f32[1024,512], index: 2, kind: input, shape index: {}]   ;;  %s3125_s3 = inlined_call_operand.hbm [shape: f32[1024,512], index: 3, kind: output, shape index: {}]  }
   0x1   :  { %8 = sst [smem:[#allocation2]] %s3122_s0 }
   0x2   :  { %9 = vsyncpa [#allocation4], 0 }
   0x3   :  { %11 = vsyncpa [#allocation4 + $0x1], 0 }
   0x4   :  { %12 = vsyncpa [#allocation7], 0 }
   0x5   :  { %14 = vsyncpa [#allocation7 + $0x1], 0 }
   0x6   :  { %15 = vsyncpa [#allocation5], 0 }
   0x7   :  { %17 = vsyncpa [#allocation5 + $0x1], 0  ;;  %s1866_s14 = smov 0   ;;  %s1868_s15 = smov 0  }
   0x8   :  { %s1870_s16 = smov 0   ;;  %s1872_s17 = smov 0  }
   0x9 LB: > { %s1887_s0 = sadd.s32 4294967295, %s1834_s17   ;;  %s1628_s18 = sadd.s32 4294967294, %s1834_s17   ;;  %s1834_s17 = sphi %s1872_s17, %s3141_s17   ;;  %s1830_s16 = sphi %s1870_s16, %s3140_s16   ;;  %s1826_s15 = sphi %s1868_s15, %s3139_s15   ;;  %s1822_s14 = sphi %s1866_s14, %s3138_s14  }
   0xa   : > { %s1891_s19 = sadd.s32 1, %s1834_s17   ;;  %s51_s20 = sadd.s32 1, %s1830_s16 }
   0xb   : > { %s48_s21 = ssub.s32 %s1834_s17, %s1891_s19  ;;  %p58_p0 = scmp.ne.s32.totalorder %s1830_s16, %s1826_s15 }
   0xc   : > { %p49_p1 = scmp.eq.s32.totalorder %s48_s21, 0  ;;  %p59_p2 = scmp.eq.s32.totalorder %s1834_s17, 0 }
   0xd   : > { %p64_p3 = scmp.ne.s32.totalorder %s1826_s15, %s1822_s14  ;;  %p65_p4 = scmp.eq.s32.totalorder %s1887_s0, 0 }
   0xe   : > { %s1903_s22 = scalar_select %p49_p1, %s1830_s16, %s51_s20  }
   0xf   : > { %p1905_p5 = por %p59_p2, %p58_p0  ;;  %p1909_p6 = por %p65_p4, %p64_p3 }
  0x10   : > { %p114_p7 = scmp.eq.s32.totalorder %s1887_s0, 1  ;;  %p120_p8 = scmp.eq.s32.totalorder %s1628_s18, 1 }
  0x11   : > { %s3129_s24 = scalar_select %p1909_p6, 1, 0 }
  0x12   : > { %p1672_p10 = scmp.lt.s32.totalorder %s1834_s17, 2  ;;  %p1916_p11 = por %p114_p7, %p58_p0 }
  0x13   : > { %p1920_p12 = por %p120_p8, %p64_p3  ;;  %s1925_s27 = sand.u32 1, %s1830_s16  }
  0x14   : > { %s3130_s25 = scalar_select %p1916_p11, 1, 0 }
  0x15   : > { %s3131_s26 = scalar_select %p1920_p12, 1, 0 }
  0x16   : > { %s1650_s28 = sshll.u32 %s1834_s17, 15  ;;  %s1631_s29 = sshll.u32 %s1925_s27, 11 }
  0x17   : > { %s1934_s5 = scalar_lea.hbm %s3123_s1, %s1650_s28  ;;  %s147_s6 = scalar_lea.vmem [#allocation3], %s1631_s29 }
  0x18   : > { %s155_s7 = sshll.u32 %s147_s6, 4  ;;  %p1940_p13 = pnand %p1672_p10, %p1905_p5  ;;  %s1944_s7 = int_to_ptr.vmem [resolvable:$true] %s155_s7 }
  0x19   : > { %s144_s9 = scalar_lea.sflag [#allocation4], %s1925_s27  ;;  %s1710_s10 = scalar_lea.hbm %s1934_s5, 32768 }
  0x1a   : > { %p1711_p0 = scmp.ne.s32.totalorder %s1934_s5, %s1710_s10  ;;  %p1712_p1 = pneg %p1940_p13 }
  0x1b   : > { %s1715_s13 = scalar_lea.hbm %s3123_s1, 65536  ;;  %p1716_p4 = scmp.lt.s32.totalorder %s1934_s5, %s3123_s1 }
  0x1c   : > { %p1713_p2 = pnand %p1712_p1, %p1711_p0  ;;  %p1717_p5 = scmp.lt.s32.totalorder %s1715_s13, %s1710_s10 }
  0x1e   : > { %p1714_p3 = pneg %p1713_p2  ;;  %p1718_p7 = por %p1717_p5, %p1716_p4 }
  0x20   : > { %p1719_p8 = pnand %p1718_p7, %p1714_p3 }
  0x22   : > { %1722 = shalt.err (!%p1719_p8)
}
  0x23   : > { %s1723_s21 = scalar_lea.vmem %s1944_s7, 32768  ;;  %s1836_s23 = smov [#allocation3]  }
  0x24   : > { %p1724_p10 = scmp.ne.s32.totalorder %s1944_s7, %s1723_s21  ;;  %s1728_s30 = sshll.u32 %s1836_s23, 4  ;;  %s1729_s30 = int_to_ptr.vmem [resolvable:$false] %s1728_s30 }
  0x25   : > { %s1730_s4 = scalar_lea.vmem %s1729_s30, 65536  ;;  %p1731_p9 = scmp.lt.s32.totalorder %s1944_s7, %s1729_s30 }
  0x26   : > { %p1726_p0 = pnand %p1724_p10, %p1712_p1  ;;  %p1732_p12 = scmp.lt.s32.totalorder %s1730_s4, %s1723_s21 }
  0x28   : > { %p1727_p2 = pneg %p1726_p0  ;;  %p1733_p11 = por %p1732_p12, %p1731_p9 }
  0x2a   : > { %p1734_p4 = pnand %p1733_p11, %p1727_p2 }
  0x2c   : > { %1737 = shalt.err (!%p1734_p4)
}
  0x2d   : > { %s1837_s6 = smov 512   ;;  %s1838_s10 = smov 32  }
  0x2e   : > { %1664 = dma.hbm_to_vmem [thread:$0]  (!%p1940_p13), %s1934_s5, 32768, %s1944_s7, %s144_s9, %s1837_s6, %s1837_s6, %s1838_s10  }
  0x2f   : > { %p1639_p9 = scmp.ge.s32.totalorder %s1834_s17, 1  ;;  %p185_p11 = scmp.lt.s32.totalorder %s1834_s17, 3 }
  0x30   : > { %s1987_s18 = scalar_lea.hbm %s3124_s2, %s1650_s28  ;;  %s169_s20 = scalar_lea.vmem [#allocation6], %s1631_s29 }
  0x31   : > { %p1978_p12 = pnand %p1639_p9, %p185_p11  ;;  %s177_s21 = sshll.u32 %s169_s20, 4  ;;  %s1991_s21 = int_to_ptr.vmem [resolvable:$true] %s177_s21 }
  0x32   : > { %s166_s5 = scalar_lea.sflag [#allocation7], %s1925_s27  ;;  %s1738_s7 = scalar_lea.hbm %s1987_s18, 32768 }
  0x33   : > { %p1739_p3 = scmp.ne.s32.totalorder %s1987_s18, %s1738_s7  ;;  %s1743_s28 = scalar_lea.hbm %s3124_s2, 65536 }
  0x34   : > { %p1744_p8 = scmp.lt.s32.totalorder %s1987_s18, %s3124_s2  ;;  %p1745_p10 = scmp.lt.s32.totalorder %s1743_s28, %s1738_s7 }
  0x35   : > { %p1741_p5 = pnand %p1739_p3, %p1712_p1 }
  0x36   : > { %p1746_p0 = por %p1745_p10, %p1744_p8 }
  0x37   : > { %p1742_p7 = pneg %p1741_p5 }
  0x39   : > { %p1747_p2 = pnand %p1746_p0, %p1742_p7 }
  0x3b   : > { %1750 = shalt.err (!%p1747_p2)
}
  0x3c   : > { %s1751_s27 = scalar_lea.vmem %s1991_s21, 32768  ;;  %s1839_s29 = smov [#allocation6]  }
  0x3d   : > { %p1752_p4 = scmp.ne.s32.totalorder %s1991_s21, %s1751_s27  ;;  %s1756_s12 = sshll.u32 %s1839_s29, 4  ;;  %s1757_s12 = int_to_ptr.vmem [resolvable:$false] %s1756_s12 }
  0x3e   : > { %s1758_s13 = scalar_lea.vmem %s1757_s12, 65536  ;;  %p1759_p3 = scmp.lt.s32.totalorder %s1991_s21, %s1757_s12 }
  0x3f   : > { %p1754_p9 = pnand %p1752_p4, %p1712_p1  ;;  %p1760_p5 = scmp.lt.s32.totalorder %s1758_s13, %s1751_s27 }
  0x41   : > { %p1755_p11 = pneg %p1754_p9  ;;  %p1761_p6 = por %p1760_p5, %p1759_p3 }
  0x43   : > { %p1762_p8 = pnand %p1761_p6, %p1755_p11 }
  0x45   : > { %1765 = shalt.err (!%p1762_p8)
}
  0x46   : > { %1667 = dma.hbm_to_vmem [thread:$0]  (!%p1940_p13), %s1987_s18, 32768, %s1991_s21, %s166_s5, %s1837_s6, %s1837_s6, %s1838_s10  }
  0x47   : > { %189 = sbr.rel (%p1978_p12) target bundleno = 291 (0x123), region = 32  ;;  %s2022_s20 = sand.u32 (!%p1978_p12), 1, %s1826_s15  }
  0x48   : > { %s2025_s7 = sshll.u32 (!%p1978_p12), %s2022_s20, 11  ;;  %s192_s9 = scalar_lea.sflag (!%p1978_p12), [#allocation4], %s2022_s20 }
  0x49   : > { %s2029_s8 = scalar_lea.vmem (!%p1978_p12), [#allocation3], %s2025_s7  ;;  %p3134_p6 = scmp.ne.s32.totalorder (!%p1978_p12), %s3129_s24, 0 }
  0x4c   : > { %1809 = dma.done.wait (%p3134_p6), %s192_s9, 32768  }
  0x4d   : > { %1811 = vsyncadd (%p3134_p6), %s192_s9, 4294934528  ;;  %s201_s6 = scalar_lea.sflag [#allocation7], %s2022_s20  ;;  %s2037_s10 = scalar_lea.vmem [#allocation6], %s2025_s7 }
  0x4e   : > { %1813 = dma.done.wait (%p3134_p6), %s201_s6, 32768  }
  0x4f   : > { %1815 = vsyncadd (%p3134_p6), %s201_s6, 4294934528  ;;  %s235_s11 = sld [smem:[#allocation2]]  ;;  %v236_v0 = vld [vmem:[%s2029_s8] sm:$0xff]  ;;  %v237_v3 = vld [vmem:[%s2029_s8 + $0x8] sm:$0xff]  ;;  %s2067_s24 = scalar_lea.vmem [#allocation8], %s2025_s7 }
  0x50   : > { %v492_v1 = vld [vmem:[%s2037_s10] sm:$0xff]  ;;  %v493_v5 = vld [vmem:[%s2037_s10 + $0x8] sm:$0xff]  ;;  %v238_v6 = vld [vmem:[%s2029_s8 + $0x10] sm:$0xff]  ;;  %s1654_s18 = sshll.u32 %s1887_s0, 15  ;;  %s1532_s21 = sshll.u32 %s2067_s24, 4  ;;  %s3075_s21 = int_to_ptr.vmem [resolvable:$true] %s1532_s21 }
  0x51   : > { %v494_v7 = vld [vmem:[%s2037_s10 + $0x10] sm:$0xff]  ;;  %v239_v10 = vld [vmem:[%s2029_s8 + $0x18] sm:$0xff]  ;;  %v240_v12 = vld [vmem:[%s2029_s8 + $0x20] sm:$0xff]  ;;  %s3073_s23 = scalar_lea.hbm %s3125_s3, %s1654_s18  ;;  %s1518_s28 = scalar_lea.sflag [#allocation5], %s2022_s20 }
  0x52   : > { %v495_v11 = vld [vmem:[%s2037_s10 + $0x18] sm:$0xff]  ;;  %v496_v15 = vld [vmem:[%s2037_s10 + $0x20] sm:$0xff]  ;;  %v241_v16 = vld [vmem:[%s2029_s8 + $0x28] sm:$0xff]  ;;  %s1766_s30 = scalar_lea.vmem %s3075_s21, 32768  ;;  %p3135_p1 = scmp.ne.s32.totalorder %s3130_s25, 0 }
  0x53   : > { %v497_v17 = vld [vmem:[%s2037_s10 + $0x28] sm:$0xff]  ;;  %v242_v22 = vld [vmem:[%s2029_s8 + $0x30] sm:$0xff]  ;;  %v243_v24 = vld [vmem:[%s2029_s8 + $0x38] sm:$0xff]  ;;  %p1767_p13 = scmp.ne.s32.totalorder %s3075_s21, %s1766_s30  ;;  %s1840_s4 = smov [#allocation8]  }
  0x54   : > { %v498_v23 = vld [vmem:[%s2037_s10 + $0x30] sm:$0xff]  ;;  %v499_v27 = vld [vmem:[%s2037_s10 + $0x38] sm:$0xff]  ;;  %v244_v28 = vld [vmem:[%s2029_s8 + $0x40] sm:$0xff]  ;;  %s1770_s27 = sshll.u32 %s1840_s4, 4  ;;  %s1771_s27 = int_to_ptr.vmem [resolvable:$false] %s1770_s27 }
  0x55   : > { %v2045_v2 = vstv %s235_s11  ;;  %v500_v29 = vld [vmem:[%s2037_s10 + $0x40] sm:$0xff]  ;;  %v245_v34 = vld [vmem:[%s2029_s8 + $0x48] sm:$0xff]  ;;  %v246_v36 = vld [vmem:[%s2029_s8 + $0x50] sm:$0xff]  ;;  %p1768_p12 = pnand %p1767_p13, %p3135_p1  ;;  %s1772_s29 = scalar_lea.vmem %s1771_s27, 65536 }
  0x56   : > { %v749_v4 = vmul.f32 %v2045_v2, %v492_v1  ;;  %v750_v8 = vmul.f32 %v2045_v2, %v493_v5  ;;  %v751_v9 = vmul.f32 %v2045_v2, %v494_v7  ;;  %v752_v14 = vmul.f32 %v2045_v2, %v495_v11  ;;  %v501_v35 = vld [vmem:[%s2037_s10 + $0x48] sm:$0xff]  ;;  %v502_v39 = vld [vmem:[%s2037_s10 + $0x50] sm:$0xff]  ;;  %v247_v40 = vld [vmem:[%s2029_s8 + $0x58] sm:$0xff]  ;;  %p1773_p10 = scmp.lt.s32.totalorder %s3075_s21, %s1771_s27  ;;  %p1774_p0 = scmp.lt.s32.totalorder %s1772_s29, %s1766_s30 }
  0x57   : > { %v753_v20 = vmul.f32 %v2045_v2, %v496_v15  ;;  %v754_v21 = vmul.f32 %v2045_v2, %v497_v17  ;;  %v755_v26 = vmul.f32 %v2045_v2, %v498_v23  ;;  %v756_v32 = vmul.f32 %v2045_v2, %v499_v27  ;;  %v503_v41 = vld [vmem:[%s2037_s10 + $0x58] sm:$0xff]  ;;  %v248_v46 = vld [vmem:[%s2029_s8 + $0x60] sm:$0xff]  ;;  %v249_v48 = vld [vmem:[%s2029_s8 + $0x68] sm:$0xff]  ;;  %p1769_p7 = pneg %p1768_p12 }
  0x58   : > { %v1005_v13 = vadd.f32 %v749_v4, %v236_v0  ;;  %v1006_v18 = vadd.f32 %v750_v8, %v237_v3  ;;  %v1007_v19 = vadd.f32 %v751_v9, %v238_v6  ;;  %v1008_v25 = vadd.f32 %v752_v14, %v239_v10  ;;  %v504_v47 = vld [vmem:[%s2037_s10 + $0x60] sm:$0xff]  ;;  %v505_v51 = vld [vmem:[%s2037_s10 + $0x68] sm:$0xff]  ;;  %v250_v52 = vld [vmem:[%s2029_s8 + $0x70] sm:$0xff]  ;;  %p1775_p2 = por %p1774_p0, %p1773_p10 }
  0x59   : > { %v1009_v30 = vadd.f32 %v753_v20, %v240_v12  ;;  %v1010_v31 = vadd.f32 %v754_v21, %v241_v16  ;;  %v757_v33 = vmul.f32 %v2045_v2, %v500_v29  ;;  %v1011_v37 = vadd.f32 %v755_v26, %v242_v22  ;;  %v506_v53 = vld [vmem:[%s2037_s10 + $0x70] sm:$0xff]  ;;  %v251_v58 = vld [vmem:[%s2029_s8 + $0x78] sm:$0xff]  ;;  %v252_v60 = vld [vmem:[%s2029_s8 + $0x80] sm:$0xff] }
  0x5a   : > { %1261 = vst [vmem:[%s2067_s24] sm:$0xff] %v1005_v13  ;;  %1262 = vst [vmem:[%s2067_s24 + $0x8] sm:$0xff] %v1006_v18  ;;  %v758_v38 = vmul.f32 %v2045_v2, %v501_v35  ;;  %v1012_v42 = vadd.f32 %v756_v32, %v243_v24  ;;  %v759_v44 = vmul.f32 %v2045_v2, %v502_v39  ;;  %v507_v59 = vld [vmem:[%s2037_s10 + $0x78] sm:$0xff]  ;;  %v508_v63 = vld [vmem:[%s2037_s10 + $0x80] sm:$0xff]  ;;  %p1776_p4 = pnand %p1775_p2, %p1769_p7 }
  0x5b   : > { %1263 = vst [vmem:[%s2067_s24 + $0x10] sm:$0xff] %v1007_v19  ;;  %1264 = vst [vmem:[%s2067_s24 + $0x18] sm:$0xff] %v1008_v25  ;;  %v1013_v43 = vadd.f32 %v757_v33, %v244_v28  ;;  %v760_v45 = vmul.f32 %v2045_v2, %v503_v41  ;;  %v761_v50 = vmul.f32 %v2045_v2, %v504_v47  ;;  %v253_v0 = vld [vmem:[%s2029_s8 + $0x88] sm:$0xff]  ;;  %v254_v7 = vld [vmem:[%s2029_s8 + $0x90] sm:$0xff] }
  0x5c   : > { %1265 = vst [vmem:[%s2067_s24 + $0x20] sm:$0xff] %v1009_v30  ;;  %1266 = vst [vmem:[%s2067_s24 + $0x28] sm:$0xff] %v1010_v31  ;;  %v1014_v49 = vadd.f32 %v758_v38, %v245_v34  ;;  %v1015_v54 = vadd.f32 %v759_v44, %v246_v36  ;;  %v762_v56 = vmul.f32 %v2045_v2, %v505_v51  ;;  %v509_v1 = vld [vmem:[%s2037_s10 + $0x88] sm:$0xff]  ;;  %v510_v8 = vld [vmem:[%s2037_s10 + $0x90] sm:$0xff] }
  0x5d   : > { %1267 = vst [vmem:[%s2067_s24 + $0x30] sm:$0xff] %v1011_v37  ;;  %1268 = vst [vmem:[%s2067_s24 + $0x38] sm:$0xff] %v1012_v42  ;;  %v1016_v55 = vadd.f32 %v760_v45, %v247_v40  ;;  %v763_v57 = vmul.f32 %v2045_v2, %v506_v53  ;;  %v1017_v61 = vadd.f32 %v761_v50, %v248_v46  ;;  %v255_v9 = vld [vmem:[%s2029_s8 + $0x98] sm:$0xff]  ;;  %v256_v13 = vld [vmem:[%s2029_s8 + $0xa0] sm:$0xff] }
  0x5e   : > { %1269 = vst [vmem:[%s2067_s24 + $0x40] sm:$0xff] %v1013_v43  ;;  %1270 = vst [vmem:[%s2067_s24 + $0x48] sm:$0xff] %v1014_v49  ;;  %v764_v62 = vmul.f32 %v2045_v2, %v507_v59  ;;  %v1018_v3 = vadd.f32 %v762_v56, %v249_v48  ;;  %v765_v5 = vmul.f32 %v2045_v2, %v508_v63  ;;  %v511_v12 = vld [vmem:[%s2037_s10 + $0x98] sm:$0xff]  ;;  %v512_v14 = vld [vmem:[%s2037_s10 + $0xa0] sm:$0xff] }
  0x5f   : > { %1271 = vst [vmem:[%s2067_s24 + $0x50] sm:$0xff] %v1015_v54  ;;  %1272 = vst [vmem:[%s2067_s24 + $0x58] sm:$0xff] %v1016_v55  ;;  %v1019_v4 = vadd.f32 %v763_v57, %v250_v52  ;;  %v766_v6 = vmul.f32 %v2045_v2, %v509_v1  ;;  %v767_v11 = vmul.f32 %v2045_v2, %v510_v8  ;;  %v257_v19 = vld [vmem:[%s2029_s8 + $0xa8] sm:$0xff]  ;;  %v258_v21 = vld [vmem:[%s2029_s8 + $0xb0] sm:$0xff] }
  0x60   : > { %1273 = vst [vmem:[%s2067_s24 + $0x60] sm:$0xff] %v1017_v61  ;;  %v1020_v10 = vadd.f32 %v764_v62, %v251_v58  ;;  %1274 = vst [vmem:[%s2067_s24 + $0x68] sm:$0xff] %v1018_v3  ;;  %v1021_v15 = vadd.f32 %v765_v5, %v252_v60  ;;  %v768_v17 = vmul.f32 %v2045_v2, %v511_v12  ;;  %v513_v20 = vld [vmem:[%s2037_s10 + $0xa8] sm:$0xff]  ;;  %v514_v24 = vld [vmem:[%s2037_s10 + $0xb0] sm:$0xff] }
  0x61   : > { %1275 = vst [vmem:[%s2067_s24 + $0x70] sm:$0xff] %v1019_v4  ;;  %v1022_v16 = vadd.f32 %v766_v6, %v253_v0  ;;  %v769_v18 = vmul.f32 %v2045_v2, %v512_v14  ;;  %v1023_v22 = vadd.f32 %v767_v11, %v254_v7  ;;  %v770_v23 = vmul.f32 %v2045_v2, %v513_v20  ;;  %v259_v25 = vld [vmem:[%s2029_s8 + $0xb8] sm:$0xff]  ;;  %v260_v31 = vld [vmem:[%s2029_s8 + $0xc0] sm:$0xff]  ;;  %v261_v33 = vld [vmem:[%s2029_s8 + $0xc8] sm:$0xff] }
  0x62   : > { %1276 = vst [vmem:[%s2067_s24 + $0x78] sm:$0xff] %v1020_v10  ;;  %v515_v26 = vld [vmem:[%s2037_s10 + $0xb8] sm:$0xff]  ;;  %1277 = vst [vmem:[%s2067_s24 + $0x80] sm:$0xff] %v1021_v15  ;;  %v1024_v27 = vadd.f32 %v768_v17, %v255_v9  ;;  %v771_v29 = vmul.f32 %v2045_v2, %v514_v24  ;;  %v516_v32 = vld [vmem:[%s2037_s10 + $0xc0] sm:$0xff] }
  0x63   : > { %1278 = vst [vmem:[%s2067_s24 + $0x88] sm:$0xff] %v1022_v16  ;;  %v1025_v28 = vadd.f32 %v769_v18, %v256_v13  ;;  %v772_v30 = vmul.f32 %v2045_v2, %v515_v26  ;;  %1279 = vst [vmem:[%s2067_s24 + $0x90] sm:$0xff] %v1023_v22  ;;  %v1026_v34 = vadd.f32 %v770_v23, %v257_v19  ;;  %v517_v36 = vld [vmem:[%s2037_s10 + $0xc8] sm:$0xff]  ;;  %v262_v37 = vld [vmem:[%s2029_s8 + $0xd0] sm:$0xff] }
  0x64   : > { %v773_v35 = vmul.f32 %v2045_v2, %v516_v32  ;;  %v518_v38 = vld [vmem:[%s2037_s10 + $0xd0] sm:$0xff]  ;;  %1280 = vst [vmem:[%s2067_s24 + $0x98] sm:$0xff] %v1024_v27  ;;  %v1027_v39 = vadd.f32 %v771_v29, %v258_v21  ;;  %v774_v41 = vmul.f32 %v2045_v2, %v517_v36  ;;  %v263_v43 = vld [vmem:[%s2029_s8 + $0xd8] sm:$0xff]  ;;  %v264_v45 = vld [vmem:[%s2029_s8 + $0xe0] sm:$0xff] }
  0x65   : > { %1281 = vst [vmem:[%s2067_s24 + $0xa0] sm:$0xff] %v1025_v28  ;;  %v1028_v40 = vadd.f32 %v772_v30, %v259_v25  ;;  %v775_v42 = vmul.f32 %v2045_v2, %v518_v38  ;;  %v519_v44 = vld [vmem:[%s2037_s10 + $0xd8] sm:$0xff]  ;;  %1282 = vst [vmem:[%s2067_s24 + $0xa8] sm:$0xff] %v1026_v34  ;;  %v520_v48 = vld [vmem:[%s2037_s10 + $0xe0] sm:$0xff] }
  0x66   : > { %v1029_v46 = vadd.f32 %v773_v35, %v260_v31  ;;  %v776_v47 = vmul.f32 %v2045_v2, %v519_v44  ;;  %v265_v49 = vld [vmem:[%s2029_s8 + $0xe8] sm:$0xff]  ;;  %1283 = vst [vmem:[%s2067_s24 + $0xb0] sm:$0xff] %v1027_v39  ;;  %v1030_v51 = vadd.f32 %v774_v41, %v261_v33  ;;  %v777_v53 = vmul.f32 %v2045_v2, %v520_v48  ;;  %v266_v55 = vld [vmem:[%s2029_s8 + $0xf0] sm:$0xff]  ;;  %v267_v57 = vld [vmem:[%s2029_s8 + $0xf8] sm:$0xff] }
  0x67   : > { %v521_v50 = vld [vmem:[%s2037_s10 + $0xe8] sm:$0xff]  ;;  %1284 = vst [vmem:[%s2067_s24 + $0xb8] sm:$0xff] %v1028_v40  ;;  %v1031_v52 = vadd.f32 %v775_v42, %v262_v37  ;;  %v522_v56 = vld [vmem:[%s2037_s10 + $0xf0] sm:$0xff]  ;;  %v523_v60 = vld [vmem:[%s2037_s10 + $0xf8] sm:$0xff] }
  0x68   : > { %v778_v54 = vmul.f32 %v2045_v2, %v521_v50  ;;  %1285 = vst [vmem:[%s2067_s24 + $0xc0] sm:$0xff] %v1029_v46  ;;  %v1032_v58 = vadd.f32 %v776_v47, %v263_v43  ;;  %v779_v59 = vmul.f32 %v2045_v2, %v522_v56  ;;  %v268_v61 = vld [vmem:[%s2029_s8 + $0x100] sm:$0xff]  ;;  %1286 = vst [vmem:[%s2067_s24 + $0xc8] sm:$0xff] %v1030_v51  ;;  %v269_v4 = vld [vmem:[%s2029_s8 + $0x108] sm:$0xff] }
  0x69   : > { %v524_v62 = vld [vmem:[%s2037_s10 + $0x100] sm:$0xff]  ;;  %1287 = vst [vmem:[%s2067_s24 + $0xd0] sm:$0xff] %v1031_v52  ;;  %v1033_v63 = vadd.f32 %v777_v53, %v264_v45  ;;  %v780_v1 = vmul.f32 %v2045_v2, %v523_v60  ;;  %v525_v5 = vld [vmem:[%s2037_s10 + $0x108] sm:$0xff]  ;;  %v270_v6 = vld [vmem:[%s2029_s8 + $0x110] sm:$0xff] }
  0x6a   : > { %v1034_v0 = vadd.f32 %v778_v54, %v265_v49  ;;  %v781_v3 = vmul.f32 %v2045_v2, %v524_v62  ;;  %1288 = vst [vmem:[%s2067_s24 + $0xd8] sm:$0xff] %v1032_v58  ;;  %v1035_v7 = vadd.f32 %v779_v59, %v266_v55  ;;  %v782_v8 = vmul.f32 %v2045_v2, %v525_v5  ;;  %v526_v9 = vld [vmem:[%s2037_s10 + $0x110] sm:$0xff]  ;;  %v271_v10 = vld [vmem:[%s2029_s8 + $0x118] sm:$0xff]  ;;  %v272_v16 = vld [vmem:[%s2029_s8 + $0x120] sm:$0xff] }
  0x6b   : > { %v527_v11 = vld [vmem:[%s2037_s10 + $0x118] sm:$0xff]  ;;  %1289 = vst [vmem:[%s2067_s24 + $0xe0] sm:$0xff] %v1033_v63  ;;  %v1036_v12 = vadd.f32 %v780_v1, %v267_v57  ;;  %v783_v14 = vmul.f32 %v2045_v2, %v526_v9  ;;  %v528_v17 = vld [vmem:[%s2037_s10 + $0x120] sm:$0xff]  ;;  %v273_v18 = vld [vmem:[%s2029_s8 + $0x128] sm:$0xff] }
  0x6c   : > { %1290 = vst [vmem:[%s2067_s24 + $0xe8] sm:$0xff] %v1034_v0  ;;  %v1037_v13 = vadd.f32 %v781_v3, %v268_v61  ;;  %v784_v15 = vmul.f32 %v2045_v2, %v527_v11  ;;  %1291 = vst [vmem:[%s2067_s24 + $0xf0] sm:$0xff] %v1035_v7  ;;  %v1038_v19 = vadd.f32 %v782_v8, %v269_v4  ;;  %v529_v21 = vld [vmem:[%s2037_s10 + $0x128] sm:$0xff]  ;;  %v274_v22 = vld [vmem:[%s2029_s8 + $0x130] sm:$0xff] }
  0x6d   : > { %v785_v20 = vmul.f32 %v2045_v2, %v528_v17  ;;  %v530_v23 = vld [vmem:[%s2037_s10 + $0x130] sm:$0xff]  ;;  %1292 = vst [vmem:[%s2067_s24 + $0xf8] sm:$0xff] %v1036_v12  ;;  %v1039_v24 = vadd.f32 %v783_v14, %v270_v6  ;;  %v786_v26 = vmul.f32 %v2045_v2, %v529_v21  ;;  %v275_v28 = vld [vmem:[%s2029_s8 + $0x138] sm:$0xff]  ;;  %v276_v30 = vld [vmem:[%s2029_s8 + $0x140] sm:$0xff] }
  0x6e   : > { %1293 = vst [vmem:[%s2067_s24 + $0x100] sm:$0xff] %v1037_v13  ;;  %v1040_v25 = vadd.f32 %v784_v15, %v271_v10  ;;  %v787_v27 = vmul.f32 %v2045_v2, %v530_v23  ;;  %v531_v29 = vld [vmem:[%s2037_s10 + $0x138] sm:$0xff]  ;;  %1294 = vst [vmem:[%s2067_s24 + $0x108] sm:$0xff] %v1038_v19  ;;  %v532_v33 = vld [vmem:[%s2037_s10 + $0x140] sm:$0xff] }
  0x6f   : > { %v1041_v31 = vadd.f32 %v785_v20, %v272_v16  ;;  %v788_v32 = vmul.f32 %v2045_v2, %v531_v29  ;;  %v277_v34 = vld [vmem:[%s2029_s8 + $0x148] sm:$0xff]  ;;  %1295 = vst [vmem:[%s2067_s24 + $0x110] sm:$0xff] %v1039_v24  ;;  %v1042_v36 = vadd.f32 %v786_v26, %v273_v18  ;;  %v789_v38 = vmul.f32 %v2045_v2, %v532_v33  ;;  %v278_v40 = vld [vmem:[%s2029_s8 + $0x150] sm:$0xff]  ;;  %v279_v42 = vld [vmem:[%s2029_s8 + $0x158] sm:$0xff] }
  0x70   : > { %v533_v35 = vld [vmem:[%s2037_s10 + $0x148] sm:$0xff]  ;;  %1296 = vst [vmem:[%s2067_s24 + $0x118] sm:$0xff] %v1040_v25  ;;  %v1043_v37 = vadd.f32 %v787_v27, %v274_v22  ;;  %v534_v41 = vld [vmem:[%s2037_s10 + $0x150] sm:$0xff]  ;;  %v535_v45 = vld [vmem:[%s2037_s10 + $0x158] sm:$0xff] }
  0x71   : > { %v790_v39 = vmul.f32 %v2045_v2, %v533_v35  ;;  %1297 = vst [vmem:[%s2067_s24 + $0x120] sm:$0xff] %v1041_v31  ;;  %v1044_v43 = vadd.f32 %v788_v32, %v275_v28  ;;  %v791_v44 = vmul.f32 %v2045_v2, %v534_v41  ;;  %v280_v46 = vld [vmem:[%s2029_s8 + $0x160] sm:$0xff]  ;;  %1298 = vst [vmem:[%s2067_s24 + $0x128] sm:$0xff] %v1042_v36  ;;  %v281_v52 = vld [vmem:[%s2029_s8 + $0x168] sm:$0xff] }
  0x72   : > { %v536_v47 = vld [vmem:[%s2037_s10 + $0x160] sm:$0xff]  ;;  %1299 = vst [vmem:[%s2067_s24 + $0x130] sm:$0xff] %v1043_v37  ;;  %v1045_v48 = vadd.f32 %v789_v38, %v276_v30  ;;  %v792_v50 = vmul.f32 %v2045_v2, %v535_v45  ;;  %v537_v53 = vld [vmem:[%s2037_s10 + $0x168] sm:$0xff]  ;;  %v282_v54 = vld [vmem:[%s2029_s8 + $0x170] sm:$0xff] }
  0x73   : > { %v1046_v49 = vadd.f32 %v790_v39, %v277_v34  ;;  %v793_v51 = vmul.f32 %v2045_v2, %v536_v47  ;;  %1300 = vst [vmem:[%s2067_s24 + $0x138] sm:$0xff] %v1044_v43  ;;  %v1047_v55 = vadd.f32 %v791_v44, %v278_v40  ;;  %v794_v56 = vmul.f32 %v2045_v2, %v537_v53  ;;  %v538_v57 = vld [vmem:[%s2037_s10 + $0x170] sm:$0xff]  ;;  %v283_v58 = vld [vmem:[%s2029_s8 + $0x178] sm:$0xff]  ;;  %v284_v0 = vld [vmem:[%s2029_s8 + $0x180] sm:$0xff] }
  0x74   : > { %v539_v59 = vld [vmem:[%s2037_s10 + $0x178] sm:$0xff]  ;;  %1301 = vst [vmem:[%s2067_s24 + $0x140] sm:$0xff] %v1045_v48  ;;  %v1048_v60 = vadd.f32 %v792_v50, %v279_v42  ;;  %v795_v62 = vmul.f32 %v2045_v2, %v538_v57  ;;  %v540_v1 = vld [vmem:[%s2037_s10 + $0x180] sm:$0xff]  ;;  %v285_v3 = vld [vmem:[%s2029_s8 + $0x188] sm:$0xff] }
  0x75   : > { %1302 = vst [vmem:[%s2067_s24 + $0x148] sm:$0xff] %v1046_v49  ;;  %v1049_v61 = vadd.f32 %v793_v51, %v280_v46  ;;  %v796_v63 = vmul.f32 %v2045_v2, %v539_v59  ;;  %1303 = vst [vmem:[%s2067_s24 + $0x150] sm:$0xff] %v1047_v55  ;;  %v1050_v4 = vadd.f32 %v794_v56, %v281_v52  ;;  %v541_v6 = vld [vmem:[%s2037_s10 + $0x188] sm:$0xff]  ;;  %v286_v7 = vld [vmem:[%s2029_s8 + $0x190] sm:$0xff] }
  0x76   : > { %v797_v5 = vmul.f32 %v2045_v2, %v540_v1  ;;  %v542_v8 = vld [vmem:[%s2037_s10 + $0x190] sm:$0xff]  ;;  %1304 = vst [vmem:[%s2067_s24 + $0x158] sm:$0xff] %v1048_v60  ;;  %v1051_v9 = vadd.f32 %v795_v62, %v282_v54  ;;  %v798_v11 = vmul.f32 %v2045_v2, %v541_v6  ;;  %v287_v13 = vld [vmem:[%s2029_s8 + $0x198] sm:$0xff]  ;;  %v288_v15 = vld [vmem:[%s2029_s8 + $0x1a0] sm:$0xff] }
  0x77   : > { %1305 = vst [vmem:[%s2067_s24 + $0x160] sm:$0xff] %v1049_v61  ;;  %v1052_v10 = vadd.f32 %v796_v63, %v283_v58  ;;  %v799_v12 = vmul.f32 %v2045_v2, %v542_v8  ;;  %v543_v14 = vld [vmem:[%s2037_s10 + $0x198] sm:$0xff]  ;;  %1306 = vst [vmem:[%s2067_s24 + $0x168] sm:$0xff] %v1050_v4  ;;  %v544_v18 = vld [vmem:[%s2037_s10 + $0x1a0] sm:$0xff] }
  0x78   : > { %v1053_v16 = vadd.f32 %v797_v5, %v284_v0  ;;  %v800_v17 = vmul.f32 %v2045_v2, %v543_v14  ;;  %v289_v19 = vld [vmem:[%s2029_s8 + $0x1a8] sm:$0xff]  ;;  %1307 = vst [vmem:[%s2067_s24 + $0x170] sm:$0xff] %v1051_v9  ;;  %v1054_v21 = vadd.f32 %v798_v11, %v285_v3  ;;  %v801_v23 = vmul.f32 %v2045_v2, %v544_v18  ;;  %v290_v25 = vld [vmem:[%s2029_s8 + $0x1b0] sm:$0xff]  ;;  %v291_v27 = vld [vmem:[%s2029_s8 + $0x1b8] sm:$0xff] }
  0x79   : > { %v545_v20 = vld [vmem:[%s2037_s10 + $0x1a8] sm:$0xff]  ;;  %1308 = vst [vmem:[%s2067_s24 + $0x178] sm:$0xff] %v1052_v10  ;;  %v1055_v22 = vadd.f32 %v799_v12, %v286_v7  ;;  %v546_v26 = vld [vmem:[%s2037_s10 + $0x1b0] sm:$0xff]  ;;  %v547_v30 = vld [vmem:[%s2037_s10 + $0x1b8] sm:$0xff] }
  0x7a   : > { %v802_v24 = vmul.f32 %v2045_v2, %v545_v20  ;;  %1309 = vst [vmem:[%s2067_s24 + $0x180] sm:$0xff] %v1053_v16  ;;  %v1056_v28 = vadd.f32 %v800_v17, %v287_v13  ;;  %v803_v29 = vmul.f32 %v2045_v2, %v546_v26  ;;  %v292_v31 = vld [vmem:[%s2029_s8 + $0x1c0] sm:$0xff]  ;;  %1310 = vst [vmem:[%s2067_s24 + $0x188] sm:$0xff] %v1054_v21  ;;  %v293_v37 = vld [vmem:[%s2029_s8 + $0x1c8] sm:$0xff] }
  0x7b   : > { %v548_v32 = vld [vmem:[%s2037_s10 + $0x1c0] sm:$0xff]  ;;  %1311 = vst [vmem:[%s2067_s24 + $0x190] sm:$0xff] %v1055_v22  ;;  %v1057_v33 = vadd.f32 %v801_v23, %v288_v15  ;;  %v804_v35 = vmul.f32 %v2045_v2, %v547_v30  ;;  %v549_v38 = vld [vmem:[%s2037_s10 + $0x1c8] sm:$0xff]  ;;  %v294_v39 = vld [vmem:[%s2029_s8 + $0x1d0] sm:$0xff] }
  0x7c   : > { %v1058_v34 = vadd.f32 %v802_v24, %v289_v19  ;;  %v805_v36 = vmul.f32 %v2045_v2, %v548_v32  ;;  %1312 = vst [vmem:[%s2067_s24 + $0x198] sm:$0xff] %v1056_v28  ;;  %v1059_v40 = vadd.f32 %v803_v29, %v290_v25  ;;  %v806_v41 = vmul.f32 %v2045_v2, %v549_v38  ;;  %v550_v42 = vld [vmem:[%s2037_s10 + $0x1d0] sm:$0xff]  ;;  %v295_v43 = vld [vmem:[%s2029_s8 + $0x1d8] sm:$0xff]  ;;  %v296_v49 = vld [vmem:[%s2029_s8 + $0x1e0] sm:$0xff] }
  0x7d   : > { %v551_v44 = vld [vmem:[%s2037_s10 + $0x1d8] sm:$0xff]  ;;  %1313 = vst [vmem:[%s2067_s24 + $0x1a0] sm:$0xff] %v1057_v33  ;;  %v1060_v45 = vadd.f32 %v804_v35, %v291_v27  ;;  %v807_v47 = vmul.f32 %v2045_v2, %v550_v42  ;;  %v552_v50 = vld [vmem:[%s2037_s10 + $0x1e0] sm:$0xff]  ;;  %v297_v51 = vld [vmem:[%s2029_s8 + $0x1e8] sm:$0xff] }
  0x7e   : > { %1314 = vst [vmem:[%s2067_s24 + $0x1a8] sm:$0xff] %v1058_v34  ;;  %v1061_v46 = vadd.f32 %v805_v36, %v292_v31  ;;  %v808_v48 = vmul.f32 %v2045_v2, %v551_v44  ;;  %1315 = vst [vmem:[%s2067_s24 + $0x1b0] sm:$0xff] %v1059_v40  ;;  %v1062_v52 = vadd.f32 %v806_v41, %v293_v37  ;;  %v553_v54 = vld [vmem:[%s2037_s10 + $0x1e8] sm:$0xff]  ;;  %v298_v55 = vld [vmem:[%s2029_s8 + $0x1f0] sm:$0xff] }
  0x7f   : > { %v809_v53 = vmul.f32 %v2045_v2, %v552_v50  ;;  %v554_v56 = vld [vmem:[%s2037_s10 + $0x1f0] sm:$0xff]  ;;  %1316 = vst [vmem:[%s2067_s24 + $0x1b8] sm:$0xff] %v1060_v45  ;;  %v1063_v57 = vadd.f32 %v807_v47, %v294_v39  ;;  %v810_v59 = vmul.f32 %v2045_v2, %v553_v54  ;;  %v299_v61 = vld [vmem:[%s2029_s8 + $0x1f8] sm:$0xff]  ;;  %v300_v63 = vld [vmem:[%s2029_s8 + $0x200] sm:$0xff] }
  0x80   : > { %1317 = vst [vmem:[%s2067_s24 + $0x1c0] sm:$0xff] %v1061_v46  ;;  %v1064_v58 = vadd.f32 %v808_v48, %v295_v43  ;;  %v811_v60 = vmul.f32 %v2045_v2, %v554_v56  ;;  %v555_v62 = vld [vmem:[%s2037_s10 + $0x1f8] sm:$0xff]  ;;  %1318 = vst [vmem:[%s2067_s24 + $0x1c8] sm:$0xff] %v1062_v52  ;;  %v556_v3 = vld [vmem:[%s2037_s10 + $0x200] sm:$0xff] }
  0x81   : > { %v1065_v0 = vadd.f32 %v809_v53, %v296_v49  ;;  %v812_v1 = vmul.f32 %v2045_v2, %v555_v62  ;;  %v301_v4 = vld [vmem:[%s2029_s8 + $0x208] sm:$0xff]  ;;  %1319 = vst [vmem:[%s2067_s24 + $0x1d0] sm:$0xff] %v1063_v57  ;;  %v1066_v6 = vadd.f32 %v810_v59, %v297_v51  ;;  %v813_v8 = vmul.f32 %v2045_v2, %v556_v3  ;;  %v302_v10 = vld [vmem:[%s2029_s8 + $0x210] sm:$0xff]  ;;  %v303_v12 = vld [vmem:[%s2029_s8 + $0x218] sm:$0xff] }
  0x82   : > { %v557_v5 = vld [vmem:[%s2037_s10 + $0x208] sm:$0xff]  ;;  %1320 = vst [vmem:[%s2067_s24 + $0x1d8] sm:$0xff] %v1064_v58  ;;  %v1067_v7 = vadd.f32 %v811_v60, %v298_v55  ;;  %v558_v11 = vld [vmem:[%s2037_s10 + $0x210] sm:$0xff]  ;;  %v559_v15 = vld [vmem:[%s2037_s10 + $0x218] sm:$0xff] }
  0x83   : > { %v814_v9 = vmul.f32 %v2045_v2, %v557_v5  ;;  %1321 = vst [vmem:[%s2067_s24 + $0x1e0] sm:$0xff] %v1065_v0  ;;  %v1068_v13 = vadd.f32 %v812_v1, %v299_v61  ;;  %v815_v14 = vmul.f32 %v2045_v2, %v558_v11  ;;  %v304_v16 = vld [vmem:[%s2029_s8 + $0x220] sm:$0xff]  ;;  %1322 = vst [vmem:[%s2067_s24 + $0x1e8] sm:$0xff] %v1066_v6  ;;  %v305_v22 = vld [vmem:[%s2029_s8 + $0x228] sm:$0xff] }
  0x84   : > { %v560_v17 = vld [vmem:[%s2037_s10 + $0x220] sm:$0xff]  ;;  %1323 = vst [vmem:[%s2067_s24 + $0x1f0] sm:$0xff] %v1067_v7  ;;  %v1069_v18 = vadd.f32 %v813_v8, %v300_v63  ;;  %v816_v20 = vmul.f32 %v2045_v2, %v559_v15  ;;  %v561_v23 = vld [vmem:[%s2037_s10 + $0x228] sm:$0xff]  ;;  %v306_v24 = vld [vmem:[%s2029_s8 + $0x230] sm:$0xff] }
  0x85   : > { %v1070_v19 = vadd.f32 %v814_v9, %v301_v4  ;;  %v817_v21 = vmul.f32 %v2045_v2, %v560_v17  ;;  %1324 = vst [vmem:[%s2067_s24 + $0x1f8] sm:$0xff] %v1068_v13  ;;  %v1071_v25 = vadd.f32 %v815_v14, %v302_v10  ;;  %v818_v26 = vmul.f32 %v2045_v2, %v561_v23  ;;  %v562_v27 = vld [vmem:[%s2037_s10 + $0x230] sm:$0xff]  ;;  %v307_v28 = vld [vmem:[%s2029_s8 + $0x238] sm:$0xff]  ;;  %v308_v34 = vld [vmem:[%s2029_s8 + $0x240] sm:$0xff] }
  0x86   : > { %v563_v29 = vld [vmem:[%s2037_s10 + $0x238] sm:$0xff]  ;;  %1325 = vst [vmem:[%s2067_s24 + $0x200] sm:$0xff] %v1069_v18  ;;  %v1072_v30 = vadd.f32 %v816_v20, %v303_v12  ;;  %v819_v32 = vmul.f32 %v2045_v2, %v562_v27  ;;  %v564_v35 = vld [vmem:[%s2037_s10 + $0x240] sm:$0xff]  ;;  %v309_v36 = vld [vmem:[%s2029_s8 + $0x248] sm:$0xff] }
  0x87   : > { %1326 = vst [vmem:[%s2067_s24 + $0x208] sm:$0xff] %v1070_v19  ;;  %v1073_v31 = vadd.f32 %v817_v21, %v304_v16  ;;  %v820_v33 = vmul.f32 %v2045_v2, %v563_v29  ;;  %1327 = vst [vmem:[%s2067_s24 + $0x210] sm:$0xff] %v1071_v25  ;;  %v1074_v37 = vadd.f32 %v818_v26, %v305_v22  ;;  %v565_v39 = vld [vmem:[%s2037_s10 + $0x248] sm:$0xff]  ;;  %v310_v40 = vld [vmem:[%s2029_s8 + $0x250] sm:$0xff] }
  0x88   : > { %v821_v38 = vmul.f32 %v2045_v2, %v564_v35  ;;  %v566_v41 = vld [vmem:[%s2037_s10 + $0x250] sm:$0xff]  ;;  %1328 = vst [vmem:[%s2067_s24 + $0x218] sm:$0xff] %v1072_v30  ;;  %v1075_v42 = vadd.f32 %v819_v32, %v306_v24  ;;  %v822_v44 = vmul.f32 %v2045_v2, %v565_v39  ;;  %v311_v46 = vld [vmem:[%s2029_s8 + $0x258] sm:$0xff]  ;;  %v312_v48 = vld [vmem:[%s2029_s8 + $0x260] sm:$0xff] }
  0x89   : > { %1329 = vst [vmem:[%s2067_s24 + $0x220] sm:$0xff] %v1073_v31  ;;  %v1076_v43 = vadd.f32 %v820_v33, %v307_v28  ;;  %v823_v45 = vmul.f32 %v2045_v2, %v566_v41  ;;  %v567_v47 = vld [vmem:[%s2037_s10 + $0x258] sm:$0xff]  ;;  %1330 = vst [vmem:[%s2067_s24 + $0x228] sm:$0xff] %v1074_v37  ;;  %v568_v51 = vld [vmem:[%s2037_s10 + $0x260] sm:$0xff] }
  0x8a   : > { %v1077_v49 = vadd.f32 %v821_v38, %v308_v34  ;;  %v824_v50 = vmul.f32 %v2045_v2, %v567_v47  ;;  %v313_v52 = vld [vmem:[%s2029_s8 + $0x268] sm:$0xff]  ;;  %1331 = vst [vmem:[%s2067_s24 + $0x230] sm:$0xff] %v1075_v42  ;;  %v1078_v54 = vadd.f32 %v822_v44, %v309_v36  ;;  %v825_v56 = vmul.f32 %v2045_v2, %v568_v51  ;;  %v314_v58 = vld [vmem:[%s2029_s8 + $0x270] sm:$0xff]  ;;  %v315_v60 = vld [vmem:[%s2029_s8 + $0x278] sm:$0xff] }
  0x8b   : > { %v569_v53 = vld [vmem:[%s2037_s10 + $0x268] sm:$0xff]  ;;  %1332 = vst [vmem:[%s2067_s24 + $0x238] sm:$0xff] %v1076_v43  ;;  %v1079_v55 = vadd.f32 %v823_v45, %v310_v40  ;;  %v570_v59 = vld [vmem:[%s2037_s10 + $0x270] sm:$0xff]  ;;  %v571_v63 = vld [vmem:[%s2037_s10 + $0x278] sm:$0xff] }
  0x8c   : > { %v826_v57 = vmul.f32 %v2045_v2, %v569_v53  ;;  %1333 = vst [vmem:[%s2067_s24 + $0x240] sm:$0xff] %v1077_v49  ;;  %v1080_v61 = vadd.f32 %v824_v50, %v311_v46  ;;  %v827_v62 = vmul.f32 %v2045_v2, %v570_v59  ;;  %v316_v0 = vld [vmem:[%s2029_s8 + $0x280] sm:$0xff]  ;;  %1334 = vst [vmem:[%s2067_s24 + $0x248] sm:$0xff] %v1078_v54  ;;  %v317_v7 = vld [vmem:[%s2029_s8 + $0x288] sm:$0xff] }
  0x8d   : > { %v572_v1 = vld [vmem:[%s2037_s10 + $0x280] sm:$0xff]  ;;  %1335 = vst [vmem:[%s2067_s24 + $0x250] sm:$0xff] %v1079_v55  ;;  %v1081_v3 = vadd.f32 %v825_v56, %v312_v48  ;;  %v828_v5 = vmul.f32 %v2045_v2, %v571_v63  ;;  %v573_v8 = vld [vmem:[%s2037_s10 + $0x288] sm:$0xff]  ;;  %v318_v9 = vld [vmem:[%s2029_s8 + $0x290] sm:$0xff] }
  0x8e   : > { %v1082_v4 = vadd.f32 %v826_v57, %v313_v52  ;;  %v829_v6 = vmul.f32 %v2045_v2, %v572_v1  ;;  %1336 = vst [vmem:[%s2067_s24 + $0x258] sm:$0xff] %v1080_v61  ;;  %v1083_v10 = vadd.f32 %v827_v62, %v314_v58  ;;  %v830_v11 = vmul.f32 %v2045_v2, %v573_v8  ;;  %v574_v12 = vld [vmem:[%s2037_s10 + $0x290] sm:$0xff]  ;;  %v319_v13 = vld [vmem:[%s2029_s8 + $0x298] sm:$0xff]  ;;  %v320_v19 = vld [vmem:[%s2029_s8 + $0x2a0] sm:$0xff] }
  0x8f   : > { %v575_v14 = vld [vmem:[%s2037_s10 + $0x298] sm:$0xff]  ;;  %1337 = vst [vmem:[%s2067_s24 + $0x260] sm:$0xff] %v1081_v3  ;;  %v1084_v15 = vadd.f32 %v828_v5, %v315_v60  ;;  %v831_v17 = vmul.f32 %v2045_v2, %v574_v12  ;;  %v576_v20 = vld [vmem:[%s2037_s10 + $0x2a0] sm:$0xff]  ;;  %v321_v21 = vld [vmem:[%s2029_s8 + $0x2a8] sm:$0xff] }
  0x90   : > { %1338 = vst [vmem:[%s2067_s24 + $0x268] sm:$0xff] %v1082_v4  ;;  %v1085_v16 = vadd.f32 %v829_v6, %v316_v0  ;;  %v832_v18 = vmul.f32 %v2045_v2, %v575_v14  ;;  %1339 = vst [vmem:[%s2067_s24 + $0x270] sm:$0xff] %v1083_v10  ;;  %v1086_v22 = vadd.f32 %v830_v11, %v317_v7  ;;  %v577_v24 = vld [vmem:[%s2037_s10 + $0x2a8] sm:$0xff]  ;;  %v322_v25 = vld [vmem:[%s2029_s8 + $0x2b0] sm:$0xff] }
  0x91   : > { %v833_v23 = vmul.f32 %v2045_v2, %v576_v20  ;;  %v578_v26 = vld [vmem:[%s2037_s10 + $0x2b0] sm:$0xff]  ;;  %1340 = vst [vmem:[%s2067_s24 + $0x278] sm:$0xff] %v1084_v15  ;;  %v1087_v27 = vadd.f32 %v831_v17, %v318_v9  ;;  %v834_v29 = vmul.f32 %v2045_v2, %v577_v24  ;;  %v323_v31 = vld [vmem:[%s2029_s8 + $0x2b8] sm:$0xff]  ;;  %v324_v33 = vld [vmem:[%s2029_s8 + $0x2c0] sm:$0xff] }
  0x92   : > { %1341 = vst [vmem:[%s2067_s24 + $0x280] sm:$0xff] %v1085_v16  ;;  %v1088_v28 = vadd.f32 %v832_v18, %v319_v13  ;;  %v835_v30 = vmul.f32 %v2045_v2, %v578_v26  ;;  %v579_v32 = vld [vmem:[%s2037_s10 + $0x2b8] sm:$0xff]  ;;  %1342 = vst [vmem:[%s2067_s24 + $0x288] sm:$0xff] %v1086_v22  ;;  %v580_v36 = vld [vmem:[%s2037_s10 + $0x2c0] sm:$0xff] }
  0x93   : > { %v1089_v34 = vadd.f32 %v833_v23, %v320_v19  ;;  %v836_v35 = vmul.f32 %v2045_v2, %v579_v32  ;;  %v325_v37 = vld [vmem:[%s2029_s8 + $0x2c8] sm:$0xff]  ;;  %1343 = vst [vmem:[%s2067_s24 + $0x290] sm:$0xff] %v1087_v27  ;;  %v1090_v39 = vadd.f32 %v834_v29, %v321_v21  ;;  %v837_v41 = vmul.f32 %v2045_v2, %v580_v36  ;;  %v326_v43 = vld [vmem:[%s2029_s8 + $0x2d0] sm:$0xff]  ;;  %v327_v45 = vld [vmem:[%s2029_s8 + $0x2d8] sm:$0xff] }
  0x94   : > { %v581_v38 = vld [vmem:[%s2037_s10 + $0x2c8] sm:$0xff]  ;;  %1344 = vst [vmem:[%s2067_s24 + $0x298] sm:$0xff] %v1088_v28  ;;  %v1091_v40 = vadd.f32 %v835_v30, %v322_v25  ;;  %v582_v44 = vld [vmem:[%s2037_s10 + $0x2d0] sm:$0xff]  ;;  %v583_v48 = vld [vmem:[%s2037_s10 + $0x2d8] sm:$0xff] }
  0x95   : > { %v838_v42 = vmul.f32 %v2045_v2, %v581_v38  ;;  %1345 = vst [vmem:[%s2067_s24 + $0x2a0] sm:$0xff] %v1089_v34  ;;  %v1092_v46 = vadd.f32 %v836_v35, %v323_v31  ;;  %v839_v47 = vmul.f32 %v2045_v2, %v582_v44  ;;  %v328_v49 = vld [vmem:[%s2029_s8 + $0x2e0] sm:$0xff]  ;;  %1346 = vst [vmem:[%s2067_s24 + $0x2a8] sm:$0xff] %v1090_v39  ;;  %v329_v55 = vld [vmem:[%s2029_s8 + $0x2e8] sm:$0xff] }
  0x96   : > { %v584_v50 = vld [vmem:[%s2037_s10 + $0x2e0] sm:$0xff]  ;;  %1347 = vst [vmem:[%s2067_s24 + $0x2b0] sm:$0xff] %v1091_v40  ;;  %v1093_v51 = vadd.f32 %v837_v41, %v324_v33  ;;  %v840_v53 = vmul.f32 %v2045_v2, %v583_v48  ;;  %v585_v56 = vld [vmem:[%s2037_s10 + $0x2e8] sm:$0xff]  ;;  %v330_v57 = vld [vmem:[%s2029_s8 + $0x2f0] sm:$0xff] }
  0x97   : > { %v1094_v52 = vadd.f32 %v838_v42, %v325_v37  ;;  %v841_v54 = vmul.f32 %v2045_v2, %v584_v50  ;;  %1348 = vst [vmem:[%s2067_s24 + $0x2b8] sm:$0xff] %v1092_v46  ;;  %v1095_v58 = vadd.f32 %v839_v47, %v326_v43  ;;  %v842_v59 = vmul.f32 %v2045_v2, %v585_v56  ;;  %v586_v60 = vld [vmem:[%s2037_s10 + $0x2f0] sm:$0xff]  ;;  %v331_v61 = vld [vmem:[%s2029_s8 + $0x2f8] sm:$0xff]  ;;  %v332_v4 = vld [vmem:[%s2029_s8 + $0x300] sm:$0xff] }
  0x98   : > { %v587_v62 = vld [vmem:[%s2037_s10 + $0x2f8] sm:$0xff]  ;;  %1349 = vst [vmem:[%s2067_s24 + $0x2c0] sm:$0xff] %v1093_v51  ;;  %v1096_v63 = vadd.f32 %v840_v53, %v327_v45  ;;  %v843_v1 = vmul.f32 %v2045_v2, %v586_v60  ;;  %v588_v5 = vld [vmem:[%s2037_s10 + $0x300] sm:$0xff]  ;;  %v333_v6 = vld [vmem:[%s2029_s8 + $0x308] sm:$0xff] }
  0x99   : > { %1350 = vst [vmem:[%s2067_s24 + $0x2c8] sm:$0xff] %v1094_v52  ;;  %v1097_v0 = vadd.f32 %v841_v54, %v328_v49  ;;  %v844_v3 = vmul.f32 %v2045_v2, %v587_v62  ;;  %1351 = vst [vmem:[%s2067_s24 + $0x2d0] sm:$0xff] %v1095_v58  ;;  %v1098_v7 = vadd.f32 %v842_v59, %v329_v55  ;;  %v589_v9 = vld [vmem:[%s2037_s10 + $0x308] sm:$0xff]  ;;  %v334_v10 = vld [vmem:[%s2029_s8 + $0x310] sm:$0xff] }
  0x9a   : > { %v845_v8 = vmul.f32 %v2045_v2, %v588_v5  ;;  %v590_v11 = vld [vmem:[%s2037_s10 + $0x310] sm:$0xff]  ;;  %1352 = vst [vmem:[%s2067_s24 + $0x2d8] sm:$0xff] %v1096_v63  ;;  %v1099_v12 = vadd.f32 %v843_v1, %v330_v57  ;;  %v846_v14 = vmul.f32 %v2045_v2, %v589_v9  ;;  %v335_v16 = vld [vmem:[%s2029_s8 + $0x318] sm:$0xff]  ;;  %v336_v18 = vld [vmem:[%s2029_s8 + $0x320] sm:$0xff] }
  0x9b   : > { %1353 = vst [vmem:[%s2067_s24 + $0x2e0] sm:$0xff] %v1097_v0  ;;  %v1100_v13 = vadd.f32 %v844_v3, %v331_v61  ;;  %v847_v15 = vmul.f32 %v2045_v2, %v590_v11  ;;  %v591_v17 = vld [vmem:[%s2037_s10 + $0x318] sm:$0xff]  ;;  %1354 = vst [vmem:[%s2067_s24 + $0x2e8] sm:$0xff] %v1098_v7  ;;  %v592_v21 = vld [vmem:[%s2037_s10 + $0x320] sm:$0xff] }
  0x9c   : > { %v1101_v19 = vadd.f32 %v845_v8, %v332_v4  ;;  %v848_v20 = vmul.f32 %v2045_v2, %v591_v17  ;;  %v337_v22 = vld [vmem:[%s2029_s8 + $0x328] sm:$0xff]  ;;  %1355 = vst [vmem:[%s2067_s24 + $0x2f0] sm:$0xff] %v1099_v12  ;;  %v1102_v24 = vadd.f32 %v846_v14, %v333_v6  ;;  %v849_v26 = vmul.f32 %v2045_v2, %v592_v21  ;;  %v338_v28 = vld [vmem:[%s2029_s8 + $0x330] sm:$0xff]  ;;  %v339_v30 = vld [vmem:[%s2029_s8 + $0x338] sm:$0xff] }
  0x9d   : > { %v593_v23 = vld [vmem:[%s2037_s10 + $0x328] sm:$0xff]  ;;  %1356 = vst [vmem:[%s2067_s24 + $0x2f8] sm:$0xff] %v1100_v13  ;;  %v1103_v25 = vadd.f32 %v847_v15, %v334_v10  ;;  %v594_v29 = vld [vmem:[%s2037_s10 + $0x330] sm:$0xff]  ;;  %v595_v33 = vld [vmem:[%s2037_s10 + $0x338] sm:$0xff] }
  0x9e   : > { %v850_v27 = vmul.f32 %v2045_v2, %v593_v23  ;;  %1357 = vst [vmem:[%s2067_s24 + $0x300] sm:$0xff] %v1101_v19  ;;  %v1104_v31 = vadd.f32 %v848_v20, %v335_v16  ;;  %v851_v32 = vmul.f32 %v2045_v2, %v594_v29  ;;  %v340_v34 = vld [vmem:[%s2029_s8 + $0x340] sm:$0xff]  ;;  %1358 = vst [vmem:[%s2067_s24 + $0x308] sm:$0xff] %v1102_v24  ;;  %v341_v40 = vld [vmem:[%s2029_s8 + $0x348] sm:$0xff] }
  0x9f   : > { %v596_v35 = vld [vmem:[%s2037_s10 + $0x340] sm:$0xff]  ;;  %1359 = vst [vmem:[%s2067_s24 + $0x310] sm:$0xff] %v1103_v25  ;;  %v1105_v36 = vadd.f32 %v849_v26, %v336_v18  ;;  %v852_v38 = vmul.f32 %v2045_v2, %v595_v33  ;;  %v597_v41 = vld [vmem:[%s2037_s10 + $0x348] sm:$0xff]  ;;  %v342_v42 = vld [vmem:[%s2029_s8 + $0x350] sm:$0xff] }
  0xa0   : > { %v1106_v37 = vadd.f32 %v850_v27, %v337_v22  ;;  %v853_v39 = vmul.f32 %v2045_v2, %v596_v35  ;;  %1360 = vst [vmem:[%s2067_s24 + $0x318] sm:$0xff] %v1104_v31  ;;  %v1107_v43 = vadd.f32 %v851_v32, %v338_v28  ;;  %v854_v44 = vmul.f32 %v2045_v2, %v597_v41  ;;  %v598_v45 = vld [vmem:[%s2037_s10 + $0x350] sm:$0xff]  ;;  %v343_v46 = vld [vmem:[%s2029_s8 + $0x358] sm:$0xff]  ;;  %v344_v52 = vld [vmem:[%s2029_s8 + $0x360] sm:$0xff] }
  0xa1   : > { %v599_v47 = vld [vmem:[%s2037_s10 + $0x358] sm:$0xff]  ;;  %1361 = vst [vmem:[%s2067_s24 + $0x320] sm:$0xff] %v1105_v36  ;;  %v1108_v48 = vadd.f32 %v852_v38, %v339_v30  ;;  %v855_v50 = vmul.f32 %v2045_v2, %v598_v45  ;;  %v600_v53 = vld [vmem:[%s2037_s10 + $0x360] sm:$0xff]  ;;  %v345_v54 = vld [vmem:[%s2029_s8 + $0x368] sm:$0xff] }
  0xa2   : > { %1362 = vst [vmem:[%s2067_s24 + $0x328] sm:$0xff] %v1106_v37  ;;  %v1109_v49 = vadd.f32 %v853_v39, %v340_v34  ;;  %v856_v51 = vmul.f32 %v2045_v2, %v599_v47  ;;  %1363 = vst [vmem:[%s2067_s24 + $0x330] sm:$0xff] %v1107_v43  ;;  %v1110_v55 = vadd.f32 %v854_v44, %v341_v40  ;;  %v601_v57 = vld [vmem:[%s2037_s10 + $0x368] sm:$0xff]  ;;  %v346_v58 = vld [vmem:[%s2029_s8 + $0x370] sm:$0xff] }
  0xa3   : > { %v857_v56 = vmul.f32 %v2045_v2, %v600_v53  ;;  %v602_v59 = vld [vmem:[%s2037_s10 + $0x370] sm:$0xff]  ;;  %1364 = vst [vmem:[%s2067_s24 + $0x338] sm:$0xff] %v1108_v48  ;;  %v1111_v60 = vadd.f32 %v855_v50, %v342_v42  ;;  %v858_v62 = vmul.f32 %v2045_v2, %v601_v57  ;;  %v347_v0 = vld [vmem:[%s2029_s8 + $0x378] sm:$0xff]  ;;  %v348_v3 = vld [vmem:[%s2029_s8 + $0x380] sm:$0xff] }
  0xa4   : > { %1365 = vst [vmem:[%s2067_s24 + $0x340] sm:$0xff] %v1109_v49  ;;  %v1112_v61 = vadd.f32 %v856_v51, %v343_v46  ;;  %v859_v63 = vmul.f32 %v2045_v2, %v602_v59  ;;  %v603_v1 = vld [vmem:[%s2037_s10 + $0x378] sm:$0xff]  ;;  %1366 = vst [vmem:[%s2067_s24 + $0x348] sm:$0xff] %v1110_v55  ;;  %v604_v6 = vld [vmem:[%s2037_s10 + $0x380] sm:$0xff] }
  0xa5   : > { %v1113_v4 = vadd.f32 %v857_v56, %v344_v52  ;;  %v860_v5 = vmul.f32 %v2045_v2, %v603_v1  ;;  %v349_v7 = vld [vmem:[%s2029_s8 + $0x388] sm:$0xff]  ;;  %1367 = vst [vmem:[%s2067_s24 + $0x350] sm:$0xff] %v1111_v60  ;;  %v1114_v9 = vadd.f32 %v858_v62, %v345_v54  ;;  %v861_v11 = vmul.f32 %v2045_v2, %v604_v6  ;;  %v350_v13 = vld [vmem:[%s2029_s8 + $0x390] sm:$0xff]  ;;  %v351_v15 = vld [vmem:[%s2029_s8 + $0x398] sm:$0xff] }
  0xa6   : > { %v605_v8 = vld [vmem:[%s2037_s10 + $0x388] sm:$0xff]  ;;  %1368 = vst [vmem:[%s2067_s24 + $0x358] sm:$0xff] %v1112_v61  ;;  %v1115_v10 = vadd.f32 %v859_v63, %v346_v58  ;;  %v606_v14 = vld [vmem:[%s2037_s10 + $0x390] sm:$0xff]  ;;  %v607_v18 = vld [vmem:[%s2037_s10 + $0x398] sm:$0xff] }
  0xa7   : > { %v862_v12 = vmul.f32 %v2045_v2, %v605_v8  ;;  %1369 = vst [vmem:[%s2067_s24 + $0x360] sm:$0xff] %v1113_v4  ;;  %v1116_v16 = vadd.f32 %v860_v5, %v347_v0  ;;  %v863_v17 = vmul.f32 %v2045_v2, %v606_v14  ;;  %v352_v19 = vld [vmem:[%s2029_s8 + $0x3a0] sm:$0xff]  ;;  %1370 = vst [vmem:[%s2067_s24 + $0x368] sm:$0xff] %v1114_v9  ;;  %v353_v25 = vld [vmem:[%s2029_s8 + $0x3a8] sm:$0xff] }
  0xa8   : > { %v608_v20 = vld [vmem:[%s2037_s10 + $0x3a0] sm:$0xff]  ;;  %1371 = vst [vmem:[%s2067_s24 + $0x370] sm:$0xff] %v1115_v10  ;;  %v1117_v21 = vadd.f32 %v861_v11, %v348_v3  ;;  %v864_v23 = vmul.f32 %v2045_v2, %v607_v18  ;;  %v609_v26 = vld [vmem:[%s2037_s10 + $0x3a8] sm:$0xff]  ;;  %v354_v27 = vld [vmem:[%s2029_s8 + $0x3b0] sm:$0xff] }
  0xa9   : > { %v1118_v22 = vadd.f32 %v862_v12, %v349_v7  ;;  %v865_v24 = vmul.f32 %v2045_v2, %v608_v20  ;;  %1372 = vst [vmem:[%s2067_s24 + $0x378] sm:$0xff] %v1116_v16  ;;  %v1119_v28 = vadd.f32 %v863_v17, %v350_v13  ;;  %v866_v29 = vmul.f32 %v2045_v2, %v609_v26  ;;  %v610_v30 = vld [vmem:[%s2037_s10 + $0x3b0] sm:$0xff]  ;;  %v355_v31 = vld [vmem:[%s2029_s8 + $0x3b8] sm:$0xff]  ;;  %v356_v37 = vld [vmem:[%s2029_s8 + $0x3c0] sm:$0xff] }
  0xaa   : > { %v611_v32 = vld [vmem:[%s2037_s10 + $0x3b8] sm:$0xff]  ;;  %1373 = vst [vmem:[%s2067_s24 + $0x380] sm:$0xff] %v1117_v21  ;;  %v1120_v33 = vadd.f32 %v864_v23, %v351_v15  ;;  %v867_v35 = vmul.f32 %v2045_v2, %v610_v30  ;;  %v612_v38 = vld [vmem:[%s2037_s10 + $0x3c0] sm:$0xff]  ;;  %v357_v39 = vld [vmem:[%s2029_s8 + $0x3c8] sm:$0xff] }
  0xab   : > { %1374 = vst [vmem:[%s2067_s24 + $0x388] sm:$0xff] %v1118_v22  ;;  %v1121_v34 = vadd.f32 %v865_v24, %v352_v19  ;;  %v868_v36 = vmul.f32 %v2045_v2, %v611_v32  ;;  %1375 = vst [vmem:[%s2067_s24 + $0x390] sm:$0xff] %v1119_v28  ;;  %v1122_v40 = vadd.f32 %v866_v29, %v353_v25  ;;  %v613_v42 = vld [vmem:[%s2037_s10 + $0x3c8] sm:$0xff]  ;;  %v358_v43 = vld [vmem:[%s2029_s8 + $0x3d0] sm:$0xff] }
  0xac   : > { %v869_v41 = vmul.f32 %v2045_v2, %v612_v38  ;;  %v614_v44 = vld [vmem:[%s2037_s10 + $0x3d0] sm:$0xff]  ;;  %1376 = vst [vmem:[%s2067_s24 + $0x398] sm:$0xff] %v1120_v33  ;;  %v1123_v45 = vadd.f32 %v867_v35, %v354_v27  ;;  %v870_v47 = vmul.f32 %v2045_v2, %v613_v42  ;;  %v359_v49 = vld [vmem:[%s2029_s8 + $0x3d8] sm:$0xff]  ;;  %v360_v51 = vld [vmem:[%s2029_s8 + $0x3e0] sm:$0xff] }
  0xad   : > { %1377 = vst [vmem:[%s2067_s24 + $0x3a0] sm:$0xff] %v1121_v34  ;;  %v1124_v46 = vadd.f32 %v868_v36, %v355_v31  ;;  %v871_v48 = vmul.f32 %v2045_v2, %v614_v44  ;;  %v615_v50 = vld [vmem:[%s2037_s10 + $0x3d8] sm:$0xff]  ;;  %1378 = vst [vmem:[%s2067_s24 + $0x3a8] sm:$0xff] %v1122_v40  ;;  %v616_v54 = vld [vmem:[%s2037_s10 + $0x3e0] sm:$0xff] }
  0xae   : > { %v1125_v52 = vadd.f32 %v869_v41, %v356_v37  ;;  %v872_v53 = vmul.f32 %v2045_v2, %v615_v50  ;;  %v361_v55 = vld [vmem:[%s2029_s8 + $0x3e8] sm:$0xff]  ;;  %1379 = vst [vmem:[%s2067_s24 + $0x3b0] sm:$0xff] %v1123_v45  ;;  %v1126_v57 = vadd.f32 %v870_v47, %v357_v39  ;;  %v873_v59 = vmul.f32 %v2045_v2, %v616_v54  ;;  %v362_v61 = vld [vmem:[%s2029_s8 + $0x3f0] sm:$0xff]  ;;  %v363_v63 = vld [vmem:[%s2029_s8 + $0x3f8] sm:$0xff] }
  0xaf   : > { %v617_v56 = vld [vmem:[%s2037_s10 + $0x3e8] sm:$0xff]  ;;  %1380 = vst [vmem:[%s2067_s24 + $0x3b8] sm:$0xff] %v1124_v46  ;;  %v1127_v58 = vadd.f32 %v871_v48, %v358_v43  ;;  %v618_v62 = vld [vmem:[%s2037_s10 + $0x3f0] sm:$0xff]  ;;  %v619_v3 = vld [vmem:[%s2037_s10 + $0x3f8] sm:$0xff] }
  0xb0   : > { %v874_v60 = vmul.f32 %v2045_v2, %v617_v56  ;;  %1381 = vst [vmem:[%s2067_s24 + $0x3c0] sm:$0xff] %v1125_v52  ;;  %v1128_v0 = vadd.f32 %v872_v53, %v359_v49  ;;  %v875_v1 = vmul.f32 %v2045_v2, %v618_v62  ;;  %v364_v4 = vld [vmem:[%s2029_s8 + $0x400] sm:$0xff]  ;;  %1382 = vst [vmem:[%s2067_s24 + $0x3c8] sm:$0xff] %v1126_v57  ;;  %v365_v10 = vld [vmem:[%s2029_s8 + $0x408] sm:$0xff] }
  0xb1   : > { %v620_v5 = vld [vmem:[%s2037_s10 + $0x400] sm:$0xff]  ;;  %1383 = vst [vmem:[%s2067_s24 + $0x3d0] sm:$0xff] %v1127_v58  ;;  %v1129_v6 = vadd.f32 %v873_v59, %v360_v51  ;;  %v876_v8 = vmul.f32 %v2045_v2, %v619_v3  ;;  %v621_v11 = vld [vmem:[%s2037_s10 + $0x408] sm:$0xff]  ;;  %v366_v12 = vld [vmem:[%s2029_s8 + $0x410] sm:$0xff] }
  0xb2   : > { %v1130_v7 = vadd.f32 %v874_v60, %v361_v55  ;;  %v877_v9 = vmul.f32 %v2045_v2, %v620_v5  ;;  %1384 = vst [vmem:[%s2067_s24 + $0x3d8] sm:$0xff] %v1128_v0  ;;  %v1131_v13 = vadd.f32 %v875_v1, %v362_v61  ;;  %v878_v14 = vmul.f32 %v2045_v2, %v621_v11  ;;  %v622_v15 = vld [vmem:[%s2037_s10 + $0x410] sm:$0xff]  ;;  %v367_v16 = vld [vmem:[%s2029_s8 + $0x418] sm:$0xff]  ;;  %v368_v22 = vld [vmem:[%s2029_s8 + $0x420] sm:$0xff] }
  0xb3   : > { %v623_v17 = vld [vmem:[%s2037_s10 + $0x418] sm:$0xff]  ;;  %1385 = vst [vmem:[%s2067_s24 + $0x3e0] sm:$0xff] %v1129_v6  ;;  %v1132_v18 = vadd.f32 %v876_v8, %v363_v63  ;;  %v879_v20 = vmul.f32 %v2045_v2, %v622_v15  ;;  %v624_v23 = vld [vmem:[%s2037_s10 + $0x420] sm:$0xff]  ;;  %v369_v24 = vld [vmem:[%s2029_s8 + $0x428] sm:$0xff] }
  0xb4   : > { %1386 = vst [vmem:[%s2067_s24 + $0x3e8] sm:$0xff] %v1130_v7  ;;  %v1133_v19 = vadd.f32 %v877_v9, %v364_v4  ;;  %v880_v21 = vmul.f32 %v2045_v2, %v623_v17  ;;  %1387 = vst [vmem:[%s2067_s24 + $0x3f0] sm:$0xff] %v1131_v13  ;;  %v1134_v25 = vadd.f32 %v878_v14, %v365_v10  ;;  %v625_v27 = vld [vmem:[%s2037_s10 + $0x428] sm:$0xff]  ;;  %v370_v28 = vld [vmem:[%s2029_s8 + $0x430] sm:$0xff] }
  0xb5   : > { %v881_v26 = vmul.f32 %v2045_v2, %v624_v23  ;;  %v626_v29 = vld [vmem:[%s2037_s10 + $0x430] sm:$0xff]  ;;  %1388 = vst [vmem:[%s2067_s24 + $0x3f8] sm:$0xff] %v1132_v18  ;;  %v1135_v30 = vadd.f32 %v879_v20, %v366_v12  ;;  %v882_v32 = vmul.f32 %v2045_v2, %v625_v27  ;;  %v371_v34 = vld [vmem:[%s2029_s8 + $0x438] sm:$0xff]  ;;  %v372_v36 = vld [vmem:[%s2029_s8 + $0x440] sm:$0xff] }
  0xb6   : > { %1389 = vst [vmem:[%s2067_s24 + $0x400] sm:$0xff] %v1133_v19  ;;  %v1136_v31 = vadd.f32 %v880_v21, %v367_v16  ;;  %v883_v33 = vmul.f32 %v2045_v2, %v626_v29  ;;  %v627_v35 = vld [vmem:[%s2037_s10 + $0x438] sm:$0xff]  ;;  %1390 = vst [vmem:[%s2067_s24 + $0x408] sm:$0xff] %v1134_v25  ;;  %v628_v39 = vld [vmem:[%s2037_s10 + $0x440] sm:$0xff] }
  0xb7   : > { %v1137_v37 = vadd.f32 %v881_v26, %v368_v22  ;;  %v884_v38 = vmul.f32 %v2045_v2, %v627_v35  ;;  %v373_v40 = vld [vmem:[%s2029_s8 + $0x448] sm:$0xff]  ;;  %1391 = vst [vmem:[%s2067_s24 + $0x410] sm:$0xff] %v1135_v30  ;;  %v1138_v42 = vadd.f32 %v882_v32, %v369_v24  ;;  %v885_v44 = vmul.f32 %v2045_v2, %v628_v39  ;;  %v374_v46 = vld [vmem:[%s2029_s8 + $0x450] sm:$0xff]  ;;  %v375_v48 = vld [vmem:[%s2029_s8 + $0x458] sm:$0xff] }
  0xb8   : > { %v629_v41 = vld [vmem:[%s2037_s10 + $0x448] sm:$0xff]  ;;  %1392 = vst [vmem:[%s2067_s24 + $0x418] sm:$0xff] %v1136_v31  ;;  %v1139_v43 = vadd.f32 %v883_v33, %v370_v28  ;;  %v630_v47 = vld [vmem:[%s2037_s10 + $0x450] sm:$0xff]  ;;  %v631_v51 = vld [vmem:[%s2037_s10 + $0x458] sm:$0xff] }
  0xb9   : > { %v886_v45 = vmul.f32 %v2045_v2, %v629_v41  ;;  %1393 = vst [vmem:[%s2067_s24 + $0x420] sm:$0xff] %v1137_v37  ;;  %v1140_v49 = vadd.f32 %v884_v38, %v371_v34  ;;  %v887_v50 = vmul.f32 %v2045_v2, %v630_v47  ;;  %v376_v52 = vld [vmem:[%s2029_s8 + $0x460] sm:$0xff]  ;;  %1394 = vst [vmem:[%s2067_s24 + $0x428] sm:$0xff] %v1138_v42  ;;  %v377_v58 = vld [vmem:[%s2029_s8 + $0x468] sm:$0xff] }
  0xba   : > { %v632_v53 = vld [vmem:[%s2037_s10 + $0x460] sm:$0xff]  ;;  %1395 = vst [vmem:[%s2067_s24 + $0x430] sm:$0xff] %v1139_v43  ;;  %v1141_v54 = vadd.f32 %v885_v44, %v372_v36  ;;  %v888_v56 = vmul.f32 %v2045_v2, %v631_v51  ;;  %v633_v59 = vld [vmem:[%s2037_s10 + $0x468] sm:$0xff]  ;;  %v378_v60 = vld [vmem:[%s2029_s8 + $0x470] sm:$0xff] }
  0xbb   : > { %v1142_v55 = vadd.f32 %v886_v45, %v373_v40  ;;  %v889_v57 = vmul.f32 %v2045_v2, %v632_v53  ;;  %1396 = vst [vmem:[%s2067_s24 + $0x438] sm:$0xff] %v1140_v49  ;;  %v1143_v61 = vadd.f32 %v887_v50, %v374_v46  ;;  %v890_v62 = vmul.f32 %v2045_v2, %v633_v59  ;;  %v634_v63 = vld [vmem:[%s2037_s10 + $0x470] sm:$0xff]  ;;  %v379_v0 = vld [vmem:[%s2029_s8 + $0x478] sm:$0xff]  ;;  %v380_v7 = vld [vmem:[%s2029_s8 + $0x480] sm:$0xff] }
  0xbc   : > { %v635_v1 = vld [vmem:[%s2037_s10 + $0x478] sm:$0xff]  ;;  %1397 = vst [vmem:[%s2067_s24 + $0x440] sm:$0xff] %v1141_v54  ;;  %v1144_v3 = vadd.f32 %v888_v56, %v375_v48  ;;  %v891_v5 = vmul.f32 %v2045_v2, %v634_v63  ;;  %v636_v8 = vld [vmem:[%s2037_s10 + $0x480] sm:$0xff]  ;;  %v381_v9 = vld [vmem:[%s2029_s8 + $0x488] sm:$0xff] }
  0xbd   : > { %1398 = vst [vmem:[%s2067_s24 + $0x448] sm:$0xff] %v1142_v55  ;;  %v1145_v4 = vadd.f32 %v889_v57, %v376_v52  ;;  %v892_v6 = vmul.f32 %v2045_v2, %v635_v1  ;;  %1399 = vst [vmem:[%s2067_s24 + $0x450] sm:$0xff] %v1143_v61  ;;  %v1146_v10 = vadd.f32 %v890_v62, %v377_v58  ;;  %v637_v12 = vld [vmem:[%s2037_s10 + $0x488] sm:$0xff]  ;;  %v382_v13 = vld [vmem:[%s2029_s8 + $0x490] sm:$0xff] }
  0xbe   : > { %v893_v11 = vmul.f32 %v2045_v2, %v636_v8  ;;  %v638_v14 = vld [vmem:[%s2037_s10 + $0x490] sm:$0xff]  ;;  %1400 = vst [vmem:[%s2067_s24 + $0x458] sm:$0xff] %v1144_v3  ;;  %v1147_v15 = vadd.f32 %v891_v5, %v378_v60  ;;  %v894_v17 = vmul.f32 %v2045_v2, %v637_v12  ;;  %v383_v19 = vld [vmem:[%s2029_s8 + $0x498] sm:$0xff]  ;;  %v384_v21 = vld [vmem:[%s2029_s8 + $0x4a0] sm:$0xff] }
  0xbf   : > { %1401 = vst [vmem:[%s2067_s24 + $0x460] sm:$0xff] %v1145_v4  ;;  %v1148_v16 = vadd.f32 %v892_v6, %v379_v0  ;;  %v895_v18 = vmul.f32 %v2045_v2, %v638_v14  ;;  %v639_v20 = vld [vmem:[%s2037_s10 + $0x498] sm:$0xff]  ;;  %1402 = vst [vmem:[%s2067_s24 + $0x468] sm:$0xff] %v1146_v10  ;;  %v640_v24 = vld [vmem:[%s2037_s10 + $0x4a0] sm:$0xff] }
  0xc0   : > { %v1149_v22 = vadd.f32 %v893_v11, %v380_v7  ;;  %v896_v23 = vmul.f32 %v2045_v2, %v639_v20  ;;  %v385_v25 = vld [vmem:[%s2029_s8 + $0x4a8] sm:$0xff]  ;;  %1403 = vst [vmem:[%s2067_s24 + $0x470] sm:$0xff] %v1147_v15  ;;  %v1150_v27 = vadd.f32 %v894_v17, %v381_v9  ;;  %v897_v29 = vmul.f32 %v2045_v2, %v640_v24  ;;  %v386_v31 = vld [vmem:[%s2029_s8 + $0x4b0] sm:$0xff]  ;;  %v387_v33 = vld [vmem:[%s2029_s8 + $0x4b8] sm:$0xff] }
  0xc1   : > { %v641_v26 = vld [vmem:[%s2037_s10 + $0x4a8] sm:$0xff]  ;;  %1404 = vst [vmem:[%s2067_s24 + $0x478] sm:$0xff] %v1148_v16  ;;  %v1151_v28 = vadd.f32 %v895_v18, %v382_v13  ;;  %v642_v32 = vld [vmem:[%s2037_s10 + $0x4b0] sm:$0xff]  ;;  %v643_v36 = vld [vmem:[%s2037_s10 + $0x4b8] sm:$0xff] }
  0xc2   : > { %v898_v30 = vmul.f32 %v2045_v2, %v641_v26  ;;  %1405 = vst [vmem:[%s2067_s24 + $0x480] sm:$0xff] %v1149_v22  ;;  %v1152_v34 = vadd.f32 %v896_v23, %v383_v19  ;;  %v899_v35 = vmul.f32 %v2045_v2, %v642_v32  ;;  %v388_v37 = vld [vmem:[%s2029_s8 + $0x4c0] sm:$0xff]  ;;  %1406 = vst [vmem:[%s2067_s24 + $0x488] sm:$0xff] %v1150_v27  ;;  %v389_v43 = vld [vmem:[%s2029_s8 + $0x4c8] sm:$0xff] }
  0xc3   : > { %v644_v38 = vld [vmem:[%s2037_s10 + $0x4c0] sm:$0xff]  ;;  %1407 = vst [vmem:[%s2067_s24 + $0x490] sm:$0xff] %v1151_v28  ;;  %v1153_v39 = vadd.f32 %v897_v29, %v384_v21  ;;  %v900_v41 = vmul.f32 %v2045_v2, %v643_v36  ;;  %v645_v44 = vld [vmem:[%s2037_s10 + $0x4c8] sm:$0xff]  ;;  %v390_v45 = vld [vmem:[%s2029_s8 + $0x4d0] sm:$0xff] }
  0xc4   : > { %v1154_v40 = vadd.f32 %v898_v30, %v385_v25  ;;  %v901_v42 = vmul.f32 %v2045_v2, %v644_v38  ;;  %1408 = vst [vmem:[%s2067_s24 + $0x498] sm:$0xff] %v1152_v34  ;;  %v1155_v46 = vadd.f32 %v899_v35, %v386_v31  ;;  %v902_v47 = vmul.f32 %v2045_v2, %v645_v44  ;;  %v646_v48 = vld [vmem:[%s2037_s10 + $0x4d0] sm:$0xff]  ;;  %v391_v49 = vld [vmem:[%s2029_s8 + $0x4d8] sm:$0xff]  ;;  %v392_v55 = vld [vmem:[%s2029_s8 + $0x4e0] sm:$0xff] }
  0xc5   : > { %v647_v50 = vld [vmem:[%s2037_s10 + $0x4d8] sm:$0xff]  ;;  %1409 = vst [vmem:[%s2067_s24 + $0x4a0] sm:$0xff] %v1153_v39  ;;  %v1156_v51 = vadd.f32 %v900_v41, %v387_v33  ;;  %v903_v53 = vmul.f32 %v2045_v2, %v646_v48  ;;  %v648_v56 = vld [vmem:[%s2037_s10 + $0x4e0] sm:$0xff]  ;;  %v393_v57 = vld [vmem:[%s2029_s8 + $0x4e8] sm:$0xff] }
  0xc6   : > { %1410 = vst [vmem:[%s2067_s24 + $0x4a8] sm:$0xff] %v1154_v40  ;;  %v1157_v52 = vadd.f32 %v901_v42, %v388_v37  ;;  %v904_v54 = vmul.f32 %v2045_v2, %v647_v50  ;;  %1411 = vst [vmem:[%s2067_s24 + $0x4b0] sm:$0xff] %v1155_v46  ;;  %v1158_v58 = vadd.f32 %v902_v47, %v389_v43  ;;  %v649_v60 = vld [vmem:[%s2037_s10 + $0x4e8] sm:$0xff]  ;;  %v394_v61 = vld [vmem:[%s2029_s8 + $0x4f0] sm:$0xff] }
  0xc7   : > { %v905_v59 = vmul.f32 %v2045_v2, %v648_v56  ;;  %v650_v62 = vld [vmem:[%s2037_s10 + $0x4f0] sm:$0xff]  ;;  %1412 = vst [vmem:[%s2067_s24 + $0x4b8] sm:$0xff] %v1156_v51  ;;  %v1159_v63 = vadd.f32 %v903_v53, %v390_v45  ;;  %v906_v1 = vmul.f32 %v2045_v2, %v649_v60  ;;  %v395_v4 = vld [vmem:[%s2029_s8 + $0x4f8] sm:$0xff]  ;;  %v396_v6 = vld [vmem:[%s2029_s8 + $0x500] sm:$0xff] }
  0xc8   : > { %1413 = vst [vmem:[%s2067_s24 + $0x4c0] sm:$0xff] %v1157_v52  ;;  %v1160_v0 = vadd.f32 %v904_v54, %v391_v49  ;;  %v907_v3 = vmul.f32 %v2045_v2, %v650_v62  ;;  %v651_v5 = vld [vmem:[%s2037_s10 + $0x4f8] sm:$0xff]  ;;  %1414 = vst [vmem:[%s2067_s24 + $0x4c8] sm:$0xff] %v1158_v58  ;;  %v652_v9 = vld [vmem:[%s2037_s10 + $0x500] sm:$0xff] }
  0xc9   : > { %v1161_v7 = vadd.f32 %v905_v59, %v392_v55  ;;  %v908_v8 = vmul.f32 %v2045_v2, %v651_v5  ;;  %v397_v10 = vld [vmem:[%s2029_s8 + $0x508] sm:$0xff]  ;;  %1415 = vst [vmem:[%s2067_s24 + $0x4d0] sm:$0xff] %v1159_v63  ;;  %v1162_v12 = vadd.f32 %v906_v1, %v393_v57  ;;  %v909_v14 = vmul.f32 %v2045_v2, %v652_v9  ;;  %v398_v16 = vld [vmem:[%s2029_s8 + $0x510] sm:$0xff]  ;;  %v399_v18 = vld [vmem:[%s2029_s8 + $0x518] sm:$0xff] }
  0xca   : > { %v653_v11 = vld [vmem:[%s2037_s10 + $0x508] sm:$0xff]  ;;  %1416 = vst [vmem:[%s2067_s24 + $0x4d8] sm:$0xff] %v1160_v0  ;;  %v1163_v13 = vadd.f32 %v907_v3, %v394_v61  ;;  %v654_v17 = vld [vmem:[%s2037_s10 + $0x510] sm:$0xff]  ;;  %v655_v21 = vld [vmem:[%s2037_s10 + $0x518] sm:$0xff] }
  0xcb   : > { %v910_v15 = vmul.f32 %v2045_v2, %v653_v11  ;;  %1417 = vst [vmem:[%s2067_s24 + $0x4e0] sm:$0xff] %v1161_v7  ;;  %v1164_v19 = vadd.f32 %v908_v8, %v395_v4  ;;  %v911_v20 = vmul.f32 %v2045_v2, %v654_v17  ;;  %v400_v22 = vld [vmem:[%s2029_s8 + $0x520] sm:$0xff]  ;;  %1418 = vst [vmem:[%s2067_s24 + $0x4e8] sm:$0xff] %v1162_v12  ;;  %v401_v28 = vld [vmem:[%s2029_s8 + $0x528] sm:$0xff] }
  0xcc   : > { %v656_v23 = vld [vmem:[%s2037_s10 + $0x520] sm:$0xff]  ;;  %1419 = vst [vmem:[%s2067_s24 + $0x4f0] sm:$0xff] %v1163_v13  ;;  %v1165_v24 = vadd.f32 %v909_v14, %v396_v6  ;;  %v912_v26 = vmul.f32 %v2045_v2, %v655_v21  ;;  %v657_v29 = vld [vmem:[%s2037_s10 + $0x528] sm:$0xff]  ;;  %v402_v30 = vld [vmem:[%s2029_s8 + $0x530] sm:$0xff] }
  0xcd   : > { %v1166_v25 = vadd.f32 %v910_v15, %v397_v10  ;;  %v913_v27 = vmul.f32 %v2045_v2, %v656_v23  ;;  %1420 = vst [vmem:[%s2067_s24 + $0x4f8] sm:$0xff] %v1164_v19  ;;  %v1167_v31 = vadd.f32 %v911_v20, %v398_v16  ;;  %v914_v32 = vmul.f32 %v2045_v2, %v657_v29  ;;  %v658_v33 = vld [vmem:[%s2037_s10 + $0x530] sm:$0xff]  ;;  %v403_v34 = vld [vmem:[%s2029_s8 + $0x538] sm:$0xff]  ;;  %v404_v40 = vld [vmem:[%s2029_s8 + $0x540] sm:$0xff] }
  0xce   : > { %v659_v35 = vld [vmem:[%s2037_s10 + $0x538] sm:$0xff]  ;;  %1421 = vst [vmem:[%s2067_s24 + $0x500] sm:$0xff] %v1165_v24  ;;  %v1168_v36 = vadd.f32 %v912_v26, %v399_v18  ;;  %v915_v38 = vmul.f32 %v2045_v2, %v658_v33  ;;  %v660_v41 = vld [vmem:[%s2037_s10 + $0x540] sm:$0xff]  ;;  %v405_v42 = vld [vmem:[%s2029_s8 + $0x548] sm:$0xff] }
  0xcf   : > { %1422 = vst [vmem:[%s2067_s24 + $0x508] sm:$0xff] %v1166_v25  ;;  %v1169_v37 = vadd.f32 %v913_v27, %v400_v22  ;;  %v916_v39 = vmul.f32 %v2045_v2, %v659_v35  ;;  %1423 = vst [vmem:[%s2067_s24 + $0x510] sm:$0xff] %v1167_v31  ;;  %v1170_v43 = vadd.f32 %v914_v32, %v401_v28  ;;  %v661_v45 = vld [vmem:[%s2037_s10 + $0x548] sm:$0xff]  ;;  %v406_v46 = vld [vmem:[%s2029_s8 + $0x550] sm:$0xff] }
  0xd0   : > { %v917_v44 = vmul.f32 %v2045_v2, %v660_v41  ;;  %v662_v47 = vld [vmem:[%s2037_s10 + $0x550] sm:$0xff]  ;;  %1424 = vst [vmem:[%s2067_s24 + $0x518] sm:$0xff] %v1168_v36  ;;  %v1171_v48 = vadd.f32 %v915_v38, %v402_v30  ;;  %v918_v50 = vmul.f32 %v2045_v2, %v661_v45  ;;  %v407_v52 = vld [vmem:[%s2029_s8 + $0x558] sm:$0xff]  ;;  %v408_v54 = vld [vmem:[%s2029_s8 + $0x560] sm:$0xff] }
  0xd1   : > { %1425 = vst [vmem:[%s2067_s24 + $0x520] sm:$0xff] %v1169_v37  ;;  %v1172_v49 = vadd.f32 %v916_v39, %v403_v34  ;;  %v919_v51 = vmul.f32 %v2045_v2, %v662_v47  ;;  %v663_v53 = vld [vmem:[%s2037_s10 + $0x558] sm:$0xff]  ;;  %1426 = vst [vmem:[%s2067_s24 + $0x528] sm:$0xff] %v1170_v43  ;;  %v664_v57 = vld [vmem:[%s2037_s10 + $0x560] sm:$0xff] }
  0xd2   : > { %v1173_v55 = vadd.f32 %v917_v44, %v404_v40  ;;  %v920_v56 = vmul.f32 %v2045_v2, %v663_v53  ;;  %v409_v58 = vld [vmem:[%s2029_s8 + $0x568] sm:$0xff]  ;;  %1427 = vst [vmem:[%s2067_s24 + $0x530] sm:$0xff] %v1171_v48  ;;  %v1174_v60 = vadd.f32 %v918_v50, %v405_v42  ;;  %v921_v62 = vmul.f32 %v2045_v2, %v664_v57  ;;  %v410_v0 = vld [vmem:[%s2029_s8 + $0x570] sm:$0xff]  ;;  %v411_v3 = vld [vmem:[%s2029_s8 + $0x578] sm:$0xff] }
  0xd3   : > { %v665_v59 = vld [vmem:[%s2037_s10 + $0x568] sm:$0xff]  ;;  %1428 = vst [vmem:[%s2067_s24 + $0x538] sm:$0xff] %v1172_v49  ;;  %v1175_v61 = vadd.f32 %v919_v51, %v406_v46  ;;  %v666_v1 = vld [vmem:[%s2037_s10 + $0x570] sm:$0xff]  ;;  %v667_v6 = vld [vmem:[%s2037_s10 + $0x578] sm:$0xff] }
  0xd4   : > { %v922_v63 = vmul.f32 %v2045_v2, %v665_v59  ;;  %1429 = vst [vmem:[%s2067_s24 + $0x540] sm:$0xff] %v1173_v55  ;;  %v1176_v4 = vadd.f32 %v920_v56, %v407_v52  ;;  %v923_v5 = vmul.f32 %v2045_v2, %v666_v1  ;;  %v412_v7 = vld [vmem:[%s2029_s8 + $0x580] sm:$0xff]  ;;  %1430 = vst [vmem:[%s2067_s24 + $0x548] sm:$0xff] %v1174_v60  ;;  %v413_v13 = vld [vmem:[%s2029_s8 + $0x588] sm:$0xff] }
  0xd5   : > { %v668_v8 = vld [vmem:[%s2037_s10 + $0x580] sm:$0xff]  ;;  %1431 = vst [vmem:[%s2067_s24 + $0x550] sm:$0xff] %v1175_v61  ;;  %v1177_v9 = vadd.f32 %v921_v62, %v408_v54  ;;  %v924_v11 = vmul.f32 %v2045_v2, %v667_v6  ;;  %v669_v14 = vld [vmem:[%s2037_s10 + $0x588] sm:$0xff]  ;;  %v414_v15 = vld [vmem:[%s2029_s8 + $0x590] sm:$0xff] }
  0xd6   : > { %v1178_v10 = vadd.f32 %v922_v63, %v409_v58  ;;  %v925_v12 = vmul.f32 %v2045_v2, %v668_v8  ;;  %1432 = vst [vmem:[%s2067_s24 + $0x558] sm:$0xff] %v1176_v4  ;;  %v1179_v16 = vadd.f32 %v923_v5, %v410_v0  ;;  %v926_v17 = vmul.f32 %v2045_v2, %v669_v14  ;;  %v670_v18 = vld [vmem:[%s2037_s10 + $0x590] sm:$0xff]  ;;  %v415_v19 = vld [vmem:[%s2029_s8 + $0x598] sm:$0xff]  ;;  %v416_v25 = vld [vmem:[%s2029_s8 + $0x5a0] sm:$0xff] }
  0xd7   : > { %v671_v20 = vld [vmem:[%s2037_s10 + $0x598] sm:$0xff]  ;;  %1433 = vst [vmem:[%s2067_s24 + $0x560] sm:$0xff] %v1177_v9  ;;  %v1180_v21 = vadd.f32 %v924_v11, %v411_v3  ;;  %v927_v23 = vmul.f32 %v2045_v2, %v670_v18  ;;  %v672_v26 = vld [vmem:[%s2037_s10 + $0x5a0] sm:$0xff]  ;;  %v417_v27 = vld [vmem:[%s2029_s8 + $0x5a8] sm:$0xff] }
  0xd8   : > { %1434 = vst [vmem:[%s2067_s24 + $0x568] sm:$0xff] %v1178_v10  ;;  %v1181_v22 = vadd.f32 %v925_v12, %v412_v7  ;;  %v928_v24 = vmul.f32 %v2045_v2, %v671_v20  ;;  %1435 = vst [vmem:[%s2067_s24 + $0x570] sm:$0xff] %v1179_v16  ;;  %v1182_v28 = vadd.f32 %v926_v17, %v413_v13  ;;  %v673_v30 = vld [vmem:[%s2037_s10 + $0x5a8] sm:$0xff]  ;;  %v418_v31 = vld [vmem:[%s2029_s8 + $0x5b0] sm:$0xff] }
  0xd9   : > { %v929_v29 = vmul.f32 %v2045_v2, %v672_v26  ;;  %v674_v32 = vld [vmem:[%s2037_s10 + $0x5b0] sm:$0xff]  ;;  %1436 = vst [vmem:[%s2067_s24 + $0x578] sm:$0xff] %v1180_v21  ;;  %v1183_v33 = vadd.f32 %v927_v23, %v414_v15  ;;  %v930_v35 = vmul.f32 %v2045_v2, %v673_v30  ;;  %v419_v37 = vld [vmem:[%s2029_s8 + $0x5b8] sm:$0xff]  ;;  %v420_v39 = vld [vmem:[%s2029_s8 + $0x5c0] sm:$0xff] }
  0xda   : > { %1437 = vst [vmem:[%s2067_s24 + $0x580] sm:$0xff] %v1181_v22  ;;  %v1184_v34 = vadd.f32 %v928_v24, %v415_v19  ;;  %v931_v36 = vmul.f32 %v2045_v2, %v674_v32  ;;  %v675_v38 = vld [vmem:[%s2037_s10 + $0x5b8] sm:$0xff]  ;;  %1438 = vst [vmem:[%s2067_s24 + $0x588] sm:$0xff] %v1182_v28  ;;  %v676_v42 = vld [vmem:[%s2037_s10 + $0x5c0] sm:$0xff] }
  0xdb   : > { %v1185_v40 = vadd.f32 %v929_v29, %v416_v25  ;;  %v932_v41 = vmul.f32 %v2045_v2, %v675_v38  ;;  %v421_v43 = vld [vmem:[%s2029_s8 + $0x5c8] sm:$0xff]  ;;  %1439 = vst [vmem:[%s2067_s24 + $0x590] sm:$0xff] %v1183_v33  ;;  %v1186_v45 = vadd.f32 %v930_v35, %v417_v27  ;;  %v933_v47 = vmul.f32 %v2045_v2, %v676_v42  ;;  %v422_v49 = vld [vmem:[%s2029_s8 + $0x5d0] sm:$0xff]  ;;  %v423_v51 = vld [vmem:[%s2029_s8 + $0x5d8] sm:$0xff] }
  0xdc   : > { %v677_v44 = vld [vmem:[%s2037_s10 + $0x5c8] sm:$0xff]  ;;  %1440 = vst [vmem:[%s2067_s24 + $0x598] sm:$0xff] %v1184_v34  ;;  %v1187_v46 = vadd.f32 %v931_v36, %v418_v31  ;;  %v678_v50 = vld [vmem:[%s2037_s10 + $0x5d0] sm:$0xff]  ;;  %v679_v54 = vld [vmem:[%s2037_s10 + $0x5d8] sm:$0xff] }
  0xdd   : > { %v934_v48 = vmul.f32 %v2045_v2, %v677_v44  ;;  %1441 = vst [vmem:[%s2067_s24 + $0x5a0] sm:$0xff] %v1185_v40  ;;  %v1188_v52 = vadd.f32 %v932_v41, %v419_v37  ;;  %v935_v53 = vmul.f32 %v2045_v2, %v678_v50  ;;  %v424_v55 = vld [vmem:[%s2029_s8 + $0x5e0] sm:$0xff]  ;;  %1442 = vst [vmem:[%s2067_s24 + $0x5a8] sm:$0xff] %v1186_v45  ;;  %v425_v61 = vld [vmem:[%s2029_s8 + $0x5e8] sm:$0xff] }
  0xde   : > { %v680_v56 = vld [vmem:[%s2037_s10 + $0x5e0] sm:$0xff]  ;;  %1443 = vst [vmem:[%s2067_s24 + $0x5b0] sm:$0xff] %v1187_v46  ;;  %v1189_v57 = vadd.f32 %v933_v47, %v420_v39  ;;  %v936_v59 = vmul.f32 %v2045_v2, %v679_v54  ;;  %v681_v62 = vld [vmem:[%s2037_s10 + $0x5e8] sm:$0xff]  ;;  %v426_v63 = vld [vmem:[%s2029_s8 + $0x5f0] sm:$0xff] }
  0xdf   : > { %v1190_v58 = vadd.f32 %v934_v48, %v421_v43  ;;  %v937_v60 = vmul.f32 %v2045_v2, %v680_v56  ;;  %1444 = vst [vmem:[%s2067_s24 + $0x5b8] sm:$0xff] %v1188_v52  ;;  %v1191_v0 = vadd.f32 %v935_v53, %v422_v49  ;;  %v938_v1 = vmul.f32 %v2045_v2, %v681_v62  ;;  %v682_v3 = vld [vmem:[%s2037_s10 + $0x5f0] sm:$0xff]  ;;  %v427_v4 = vld [vmem:[%s2029_s8 + $0x5f8] sm:$0xff]  ;;  %v428_v10 = vld [vmem:[%s2029_s8 + $0x600] sm:$0xff] }
  0xe0   : > { %v683_v5 = vld [vmem:[%s2037_s10 + $0x5f8] sm:$0xff]  ;;  %1445 = vst [vmem:[%s2067_s24 + $0x5c0] sm:$0xff] %v1189_v57  ;;  %v1192_v6 = vadd.f32 %v936_v59, %v423_v51  ;;  %v939_v8 = vmul.f32 %v2045_v2, %v682_v3  ;;  %v684_v11 = vld [vmem:[%s2037_s10 + $0x600] sm:$0xff]  ;;  %v429_v12 = vld [vmem:[%s2029_s8 + $0x608] sm:$0xff] }
  0xe1   : > { %1446 = vst [vmem:[%s2067_s24 + $0x5c8] sm:$0xff] %v1190_v58  ;;  %v1193_v7 = vadd.f32 %v937_v60, %v424_v55  ;;  %v940_v9 = vmul.f32 %v2045_v2, %v683_v5  ;;  %1447 = vst [vmem:[%s2067_s24 + $0x5d0] sm:$0xff] %v1191_v0  ;;  %v1194_v13 = vadd.f32 %v938_v1, %v425_v61  ;;  %v685_v15 = vld [vmem:[%s2037_s10 + $0x608] sm:$0xff]  ;;  %v430_v16 = vld [vmem:[%s2029_s8 + $0x610] sm:$0xff] }
  0xe2   : > { %v941_v14 = vmul.f32 %v2045_v2, %v684_v11  ;;  %v686_v17 = vld [vmem:[%s2037_s10 + $0x610] sm:$0xff]  ;;  %1448 = vst [vmem:[%s2067_s24 + $0x5d8] sm:$0xff] %v1192_v6  ;;  %v1195_v18 = vadd.f32 %v939_v8, %v426_v63  ;;  %v942_v20 = vmul.f32 %v2045_v2, %v685_v15  ;;  %v431_v22 = vld [vmem:[%s2029_s8 + $0x618] sm:$0xff]  ;;  %v432_v24 = vld [vmem:[%s2029_s8 + $0x620] sm:$0xff] }
  0xe3   : > { %1449 = vst [vmem:[%s2067_s24 + $0x5e0] sm:$0xff] %v1193_v7  ;;  %v1196_v19 = vadd.f32 %v940_v9, %v427_v4  ;;  %v943_v21 = vmul.f32 %v2045_v2, %v686_v17  ;;  %v687_v23 = vld [vmem:[%s2037_s10 + $0x618] sm:$0xff]  ;;  %1450 = vst [vmem:[%s2067_s24 + $0x5e8] sm:$0xff] %v1194_v13  ;;  %v688_v27 = vld [vmem:[%s2037_s10 + $0x620] sm:$0xff] }
  0xe4   : > { %v1197_v25 = vadd.f32 %v941_v14, %v428_v10  ;;  %v944_v26 = vmul.f32 %v2045_v2, %v687_v23  ;;  %v433_v28 = vld [vmem:[%s2029_s8 + $0x628] sm:$0xff]  ;;  %1451 = vst [vmem:[%s2067_s24 + $0x5f0] sm:$0xff] %v1195_v18  ;;  %v1198_v30 = vadd.f32 %v942_v20, %v429_v12  ;;  %v945_v32 = vmul.f32 %v2045_v2, %v688_v27  ;;  %v434_v34 = vld [vmem:[%s2029_s8 + $0x630] sm:$0xff]  ;;  %v435_v36 = vld [vmem:[%s2029_s8 + $0x638] sm:$0xff] }
  0xe5   : > { %v689_v29 = vld [vmem:[%s2037_s10 + $0x628] sm:$0xff]  ;;  %1452 = vst [vmem:[%s2067_s24 + $0x5f8] sm:$0xff] %v1196_v19  ;;  %v1199_v31 = vadd.f32 %v943_v21, %v430_v16  ;;  %v690_v35 = vld [vmem:[%s2037_s10 + $0x630] sm:$0xff]  ;;  %v691_v39 = vld [vmem:[%s2037_s10 + $0x638] sm:$0xff] }
  0xe6   : > { %v946_v33 = vmul.f32 %v2045_v2, %v689_v29  ;;  %1453 = vst [vmem:[%s2067_s24 + $0x600] sm:$0xff] %v1197_v25  ;;  %v1200_v37 = vadd.f32 %v944_v26, %v431_v22  ;;  %v947_v38 = vmul.f32 %v2045_v2, %v690_v35  ;;  %v436_v40 = vld [vmem:[%s2029_s8 + $0x640] sm:$0xff]  ;;  %1454 = vst [vmem:[%s2067_s24 + $0x608] sm:$0xff] %v1198_v30  ;;  %v437_v46 = vld [vmem:[%s2029_s8 + $0x648] sm:$0xff] }
  0xe7   : > { %v692_v41 = vld [vmem:[%s2037_s10 + $0x640] sm:$0xff]  ;;  %1455 = vst [vmem:[%s2067_s24 + $0x610] sm:$0xff] %v1199_v31  ;;  %v1201_v42 = vadd.f32 %v945_v32, %v432_v24  ;;  %v948_v44 = vmul.f32 %v2045_v2, %v691_v39  ;;  %v693_v47 = vld [vmem:[%s2037_s10 + $0x648] sm:$0xff]  ;;  %v438_v48 = vld [vmem:[%s2029_s8 + $0x650] sm:$0xff] }
  0xe8   : > { %v1202_v43 = vadd.f32 %v946_v33, %v433_v28  ;;  %v949_v45 = vmul.f32 %v2045_v2, %v692_v41  ;;  %1456 = vst [vmem:[%s2067_s24 + $0x618] sm:$0xff] %v1200_v37  ;;  %v1203_v49 = vadd.f32 %v947_v38, %v434_v34  ;;  %v950_v50 = vmul.f32 %v2045_v2, %v693_v47  ;;  %v694_v51 = vld [vmem:[%s2037_s10 + $0x650] sm:$0xff]  ;;  %v439_v52 = vld [vmem:[%s2029_s8 + $0x658] sm:$0xff]  ;;  %v440_v58 = vld [vmem:[%s2029_s8 + $0x660] sm:$0xff] }
  0xe9   : > { %v695_v53 = vld [vmem:[%s2037_s10 + $0x658] sm:$0xff]  ;;  %1457 = vst [vmem:[%s2067_s24 + $0x620] sm:$0xff] %v1201_v42  ;;  %v1204_v54 = vadd.f32 %v948_v44, %v435_v36  ;;  %v951_v56 = vmul.f32 %v2045_v2, %v694_v51  ;;  %v696_v59 = vld [vmem:[%s2037_s10 + $0x660] sm:$0xff]  ;;  %v441_v60 = vld [vmem:[%s2029_s8 + $0x668] sm:$0xff] }
  0xea   : > { %1458 = vst [vmem:[%s2067_s24 + $0x628] sm:$0xff] %v1202_v43  ;;  %v1205_v55 = vadd.f32 %v949_v45, %v436_v40  ;;  %v952_v57 = vmul.f32 %v2045_v2, %v695_v53  ;;  %1459 = vst [vmem:[%s2067_s24 + $0x630] sm:$0xff] %v1203_v49  ;;  %v1206_v61 = vadd.f32 %v950_v50, %v437_v46  ;;  %v697_v63 = vld [vmem:[%s2037_s10 + $0x668] sm:$0xff]  ;;  %v442_v0 = vld [vmem:[%s2029_s8 + $0x670] sm:$0xff] }
  0xeb   : > { %v953_v62 = vmul.f32 %v2045_v2, %v696_v59  ;;  %v698_v1 = vld [vmem:[%s2037_s10 + $0x670] sm:$0xff]  ;;  %1460 = vst [vmem:[%s2067_s24 + $0x638] sm:$0xff] %v1204_v54  ;;  %v1207_v3 = vadd.f32 %v951_v56, %v438_v48  ;;  %v954_v5 = vmul.f32 %v2045_v2, %v697_v63  ;;  %v443_v7 = vld [vmem:[%s2029_s8 + $0x678] sm:$0xff]  ;;  %v444_v9 = vld [vmem:[%s2029_s8 + $0x680] sm:$0xff] }
  0xec   : > { %1461 = vst [vmem:[%s2067_s24 + $0x640] sm:$0xff] %v1205_v55  ;;  %v1208_v4 = vadd.f32 %v952_v57, %v439_v52  ;;  %v955_v6 = vmul.f32 %v2045_v2, %v698_v1  ;;  %v699_v8 = vld [vmem:[%s2037_s10 + $0x678] sm:$0xff]  ;;  %1462 = vst [vmem:[%s2067_s24 + $0x648] sm:$0xff] %v1206_v61  ;;  %v700_v12 = vld [vmem:[%s2037_s10 + $0x680] sm:$0xff] }
  0xed   : > { %v1209_v10 = vadd.f32 %v953_v62, %v440_v58  ;;  %v956_v11 = vmul.f32 %v2045_v2, %v699_v8  ;;  %v445_v13 = vld [vmem:[%s2029_s8 + $0x688] sm:$0xff]  ;;  %1463 = vst [vmem:[%s2067_s24 + $0x650] sm:$0xff] %v1207_v3  ;;  %v1210_v15 = vadd.f32 %v954_v5, %v441_v60  ;;  %v957_v17 = vmul.f32 %v2045_v2, %v700_v12  ;;  %v446_v19 = vld [vmem:[%s2029_s8 + $0x690] sm:$0xff]  ;;  %v447_v21 = vld [vmem:[%s2029_s8 + $0x698] sm:$0xff] }
  0xee   : > { %v701_v14 = vld [vmem:[%s2037_s10 + $0x688] sm:$0xff]  ;;  %1464 = vst [vmem:[%s2067_s24 + $0x658] sm:$0xff] %v1208_v4  ;;  %v1211_v16 = vadd.f32 %v955_v6, %v442_v0  ;;  %v702_v20 = vld [vmem:[%s2037_s10 + $0x690] sm:$0xff]  ;;  %v703_v24 = vld [vmem:[%s2037_s10 + $0x698] sm:$0xff] }
  0xef   : > { %v958_v18 = vmul.f32 %v2045_v2, %v701_v14  ;;  %1465 = vst [vmem:[%s2067_s24 + $0x660] sm:$0xff] %v1209_v10  ;;  %v1212_v22 = vadd.f32 %v956_v11, %v443_v7  ;;  %v959_v23 = vmul.f32 %v2045_v2, %v702_v20  ;;  %v448_v25 = vld [vmem:[%s2029_s8 + $0x6a0] sm:$0xff]  ;;  %1466 = vst [vmem:[%s2067_s24 + $0x668] sm:$0xff] %v1210_v15  ;;  %v449_v31 = vld [vmem:[%s2029_s8 + $0x6a8] sm:$0xff] }
  0xf0   : > { %v704_v26 = vld [vmem:[%s2037_s10 + $0x6a0] sm:$0xff]  ;;  %1467 = vst [vmem:[%s2067_s24 + $0x670] sm:$0xff] %v1211_v16  ;;  %v1213_v27 = vadd.f32 %v957_v17, %v444_v9  ;;  %v960_v29 = vmul.f32 %v2045_v2, %v703_v24  ;;  %v705_v32 = vld [vmem:[%s2037_s10 + $0x6a8] sm:$0xff]  ;;  %v450_v33 = vld [vmem:[%s2029_s8 + $0x6b0] sm:$0xff] }
  0xf1   : > { %v1214_v28 = vadd.f32 %v958_v18, %v445_v13  ;;  %v961_v30 = vmul.f32 %v2045_v2, %v704_v26  ;;  %1468 = vst [vmem:[%s2067_s24 + $0x678] sm:$0xff] %v1212_v22  ;;  %v1215_v34 = vadd.f32 %v959_v23, %v446_v19  ;;  %v962_v35 = vmul.f32 %v2045_v2, %v705_v32  ;;  %v706_v36 = vld [vmem:[%s2037_s10 + $0x6b0] sm:$0xff]  ;;  %v451_v37 = vld [vmem:[%s2029_s8 + $0x6b8] sm:$0xff]  ;;  %v452_v43 = vld [vmem:[%s2029_s8 + $0x6c0] sm:$0xff] }
  0xf2   : > { %v707_v38 = vld [vmem:[%s2037_s10 + $0x6b8] sm:$0xff]  ;;  %1469 = vst [vmem:[%s2067_s24 + $0x680] sm:$0xff] %v1213_v27  ;;  %v1216_v39 = vadd.f32 %v960_v29, %v447_v21  ;;  %v963_v41 = vmul.f32 %v2045_v2, %v706_v36  ;;  %v708_v44 = vld [vmem:[%s2037_s10 + $0x6c0] sm:$0xff]  ;;  %v453_v45 = vld [vmem:[%s2029_s8 + $0x6c8] sm:$0xff] }
  0xf3   : > { %1470 = vst [vmem:[%s2067_s24 + $0x688] sm:$0xff] %v1214_v28  ;;  %v1217_v40 = vadd.f32 %v961_v30, %v448_v25  ;;  %v964_v42 = vmul.f32 %v2045_v2, %v707_v38  ;;  %1471 = vst [vmem:[%s2067_s24 + $0x690] sm:$0xff] %v1215_v34  ;;  %v1218_v46 = vadd.f32 %v962_v35, %v449_v31  ;;  %v709_v48 = vld [vmem:[%s2037_s10 + $0x6c8] sm:$0xff]  ;;  %v454_v49 = vld [vmem:[%s2029_s8 + $0x6d0] sm:$0xff] }
  0xf4   : > { %v965_v47 = vmul.f32 %v2045_v2, %v708_v44  ;;  %v710_v50 = vld [vmem:[%s2037_s10 + $0x6d0] sm:$0xff]  ;;  %1472 = vst [vmem:[%s2067_s24 + $0x698] sm:$0xff] %v1216_v39  ;;  %v1219_v51 = vadd.f32 %v963_v41, %v450_v33  ;;  %v966_v53 = vmul.f32 %v2045_v2, %v709_v48  ;;  %v455_v55 = vld [vmem:[%s2029_s8 + $0x6d8] sm:$0xff]  ;;  %v456_v57 = vld [vmem:[%s2029_s8 + $0x6e0] sm:$0xff] }
  0xf5   : > { %1473 = vst [vmem:[%s2067_s24 + $0x6a0] sm:$0xff] %v1217_v40  ;;  %v1220_v52 = vadd.f32 %v964_v42, %v451_v37  ;;  %v967_v54 = vmul.f32 %v2045_v2, %v710_v50  ;;  %v711_v56 = vld [vmem:[%s2037_s10 + $0x6d8] sm:$0xff]  ;;  %1474 = vst [vmem:[%s2067_s24 + $0x6a8] sm:$0xff] %v1218_v46  ;;  %v712_v60 = vld [vmem:[%s2037_s10 + $0x6e0] sm:$0xff] }
  0xf6   : > { %v1221_v58 = vadd.f32 %v965_v47, %v452_v43  ;;  %v968_v59 = vmul.f32 %v2045_v2, %v711_v56  ;;  %v457_v61 = vld [vmem:[%s2029_s8 + $0x6e8] sm:$0xff]  ;;  %1475 = vst [vmem:[%s2067_s24 + $0x6b0] sm:$0xff] %v1219_v51  ;;  %v1222_v63 = vadd.f32 %v966_v53, %v453_v45  ;;  %v969_v1 = vmul.f32 %v2045_v2, %v712_v60  ;;  %v458_v4 = vld [vmem:[%s2029_s8 + $0x6f0] sm:$0xff]  ;;  %v459_v6 = vld [vmem:[%s2029_s8 + $0x6f8] sm:$0xff] }
  0xf7   : > { %v713_v62 = vld [vmem:[%s2037_s10 + $0x6e8] sm:$0xff]  ;;  %1476 = vst [vmem:[%s2067_s24 + $0x6b8] sm:$0xff] %v1220_v52  ;;  %v1223_v0 = vadd.f32 %v967_v54, %v454_v49  ;;  %v714_v5 = vld [vmem:[%s2037_s10 + $0x6f0] sm:$0xff]  ;;  %v715_v9 = vld [vmem:[%s2037_s10 + $0x6f8] sm:$0xff] }
  0xf8   : > { %v970_v3 = vmul.f32 %v2045_v2, %v713_v62  ;;  %1477 = vst [vmem:[%s2067_s24 + $0x6c0] sm:$0xff] %v1221_v58  ;;  %v1224_v7 = vadd.f32 %v968_v59, %v455_v55  ;;  %v971_v8 = vmul.f32 %v2045_v2, %v714_v5  ;;  %v460_v10 = vld [vmem:[%s2029_s8 + $0x700] sm:$0xff]  ;;  %1478 = vst [vmem:[%s2067_s24 + $0x6c8] sm:$0xff] %v1222_v63  ;;  %v461_v16 = vld [vmem:[%s2029_s8 + $0x708] sm:$0xff] }
  0xf9   : > { %v716_v11 = vld [vmem:[%s2037_s10 + $0x700] sm:$0xff]  ;;  %1479 = vst [vmem:[%s2067_s24 + $0x6d0] sm:$0xff] %v1223_v0  ;;  %v1225_v12 = vadd.f32 %v969_v1, %v456_v57  ;;  %v972_v14 = vmul.f32 %v2045_v2, %v715_v9  ;;  %v717_v17 = vld [vmem:[%s2037_s10 + $0x708] sm:$0xff]  ;;  %v462_v18 = vld [vmem:[%s2029_s8 + $0x710] sm:$0xff] }
  0xfa   : > { %v1226_v13 = vadd.f32 %v970_v3, %v457_v61  ;;  %v973_v15 = vmul.f32 %v2045_v2, %v716_v11  ;;  %1480 = vst [vmem:[%s2067_s24 + $0x6d8] sm:$0xff] %v1224_v7  ;;  %v1227_v19 = vadd.f32 %v971_v8, %v458_v4  ;;  %v974_v20 = vmul.f32 %v2045_v2, %v717_v17  ;;  %v718_v21 = vld [vmem:[%s2037_s10 + $0x710] sm:$0xff]  ;;  %v463_v22 = vld [vmem:[%s2029_s8 + $0x718] sm:$0xff]  ;;  %v464_v28 = vld [vmem:[%s2029_s8 + $0x720] sm:$0xff] }
  0xfb   : > { %v719_v23 = vld [vmem:[%s2037_s10 + $0x718] sm:$0xff]  ;;  %1481 = vst [vmem:[%s2067_s24 + $0x6e0] sm:$0xff] %v1225_v12  ;;  %v1228_v24 = vadd.f32 %v972_v14, %v459_v6  ;;  %v975_v26 = vmul.f32 %v2045_v2, %v718_v21  ;;  %v720_v29 = vld [vmem:[%s2037_s10 + $0x720] sm:$0xff]  ;;  %v465_v30 = vld [vmem:[%s2029_s8 + $0x728] sm:$0xff] }
  0xfc   : > { %1482 = vst [vmem:[%s2067_s24 + $0x6e8] sm:$0xff] %v1226_v13  ;;  %v1229_v25 = vadd.f32 %v973_v15, %v460_v10  ;;  %v976_v27 = vmul.f32 %v2045_v2, %v719_v23  ;;  %1483 = vst [vmem:[%s2067_s24 + $0x6f0] sm:$0xff] %v1227_v19  ;;  %v1230_v31 = vadd.f32 %v974_v20, %v461_v16  ;;  %v721_v33 = vld [vmem:[%s2037_s10 + $0x728] sm:$0xff]  ;;  %v466_v34 = vld [vmem:[%s2029_s8 + $0x730] sm:$0xff] }
  0xfd   : > { %v977_v32 = vmul.f32 %v2045_v2, %v720_v29  ;;  %v722_v35 = vld [vmem:[%s2037_s10 + $0x730] sm:$0xff]  ;;  %1484 = vst [vmem:[%s2067_s24 + $0x6f8] sm:$0xff] %v1228_v24  ;;  %v1231_v36 = vadd.f32 %v975_v26, %v462_v18  ;;  %v978_v38 = vmul.f32 %v2045_v2, %v721_v33  ;;  %v467_v40 = vld [vmem:[%s2029_s8 + $0x738] sm:$0xff]  ;;  %v468_v42 = vld [vmem:[%s2029_s8 + $0x740] sm:$0xff] }
  0xfe   : > { %1485 = vst [vmem:[%s2067_s24 + $0x700] sm:$0xff] %v1229_v25  ;;  %v1232_v37 = vadd.f32 %v976_v27, %v463_v22  ;;  %v979_v39 = vmul.f32 %v2045_v2, %v722_v35  ;;  %v723_v41 = vld [vmem:[%s2037_s10 + $0x738] sm:$0xff]  ;;  %1486 = vst [vmem:[%s2067_s24 + $0x708] sm:$0xff] %v1230_v31  ;;  %v724_v45 = vld [vmem:[%s2037_s10 + $0x740] sm:$0xff] }
  0xff   : > { %v1233_v43 = vadd.f32 %v977_v32, %v464_v28  ;;  %v980_v44 = vmul.f32 %v2045_v2, %v723_v41  ;;  %v469_v46 = vld [vmem:[%s2029_s8 + $0x748] sm:$0xff]  ;;  %1487 = vst [vmem:[%s2067_s24 + $0x710] sm:$0xff] %v1231_v36  ;;  %v1234_v48 = vadd.f32 %v978_v38, %v465_v30  ;;  %v981_v50 = vmul.f32 %v2045_v2, %v724_v45  ;;  %v470_v52 = vld [vmem:[%s2029_s8 + $0x750] sm:$0xff]  ;;  %v471_v54 = vld [vmem:[%s2029_s8 + $0x758] sm:$0xff] }
 0x100   : > { %v725_v47 = vld [vmem:[%s2037_s10 + $0x748] sm:$0xff]  ;;  %1488 = vst [vmem:[%s2067_s24 + $0x718] sm:$0xff] %v1232_v37  ;;  %v1235_v49 = vadd.f32 %v979_v39, %v466_v34  ;;  %v726_v53 = vld [vmem:[%s2037_s10 + $0x750] sm:$0xff]  ;;  %v727_v57 = vld [vmem:[%s2037_s10 + $0x758] sm:$0xff] }
 0x101   : > { %v982_v51 = vmul.f32 %v2045_v2, %v725_v47  ;;  %1489 = vst [vmem:[%s2067_s24 + $0x720] sm:$0xff] %v1233_v43  ;;  %v1236_v55 = vadd.f32 %v980_v44, %v467_v40  ;;  %v983_v56 = vmul.f32 %v2045_v2, %v726_v53  ;;  %v472_v58 = vld [vmem:[%s2029_s8 + $0x760] sm:$0xff]  ;;  %1490 = vst [vmem:[%s2067_s24 + $0x728] sm:$0xff] %v1234_v48  ;;  %v473_v0 = vld [vmem:[%s2029_s8 + $0x768] sm:$0xff] }
 0x102   : > { %v728_v59 = vld [vmem:[%s2037_s10 + $0x760] sm:$0xff]  ;;  %1491 = vst [vmem:[%s2067_s24 + $0x730] sm:$0xff] %v1235_v49  ;;  %v1237_v60 = vadd.f32 %v981_v50, %v468_v42  ;;  %v984_v62 = vmul.f32 %v2045_v2, %v727_v57  ;;  %v729_v1 = vld [vmem:[%s2037_s10 + $0x768] sm:$0xff]  ;;  %v474_v3 = vld [vmem:[%s2029_s8 + $0x770] sm:$0xff] }
 0x103   : > { %v1238_v61 = vadd.f32 %v982_v51, %v469_v46  ;;  %v985_v63 = vmul.f32 %v2045_v2, %v728_v59  ;;  %1492 = vst [vmem:[%s2067_s24 + $0x738] sm:$0xff] %v1236_v55  ;;  %v1239_v4 = vadd.f32 %v983_v56, %v470_v52  ;;  %v986_v5 = vmul.f32 %v2045_v2, %v729_v1  ;;  %v730_v6 = vld [vmem:[%s2037_s10 + $0x770] sm:$0xff]  ;;  %v475_v7 = vld [vmem:[%s2029_s8 + $0x778] sm:$0xff]  ;;  %v476_v13 = vld [vmem:[%s2029_s8 + $0x780] sm:$0xff] }
 0x104   : > { %v731_v8 = vld [vmem:[%s2037_s10 + $0x778] sm:$0xff]  ;;  %1493 = vst [vmem:[%s2067_s24 + $0x740] sm:$0xff] %v1237_v60  ;;  %v1240_v9 = vadd.f32 %v984_v62, %v471_v54  ;;  %v987_v11 = vmul.f32 %v2045_v2, %v730_v6  ;;  %v732_v14 = vld [vmem:[%s2037_s10 + $0x780] sm:$0xff]  ;;  %v477_v15 = vld [vmem:[%s2029_s8 + $0x788] sm:$0xff] }
 0x105   : > { %1494 = vst [vmem:[%s2067_s24 + $0x748] sm:$0xff] %v1238_v61  ;;  %v1241_v10 = vadd.f32 %v985_v63, %v472_v58  ;;  %v988_v12 = vmul.f32 %v2045_v2, %v731_v8  ;;  %1495 = vst [vmem:[%s2067_s24 + $0x750] sm:$0xff] %v1239_v4  ;;  %v1242_v16 = vadd.f32 %v986_v5, %v473_v0  ;;  %v733_v18 = vld [vmem:[%s2037_s10 + $0x788] sm:$0xff]  ;;  %v478_v19 = vld [vmem:[%s2029_s8 + $0x790] sm:$0xff] }
 0x106   : > { %v989_v17 = vmul.f32 %v2045_v2, %v732_v14  ;;  %v734_v20 = vld [vmem:[%s2037_s10 + $0x790] sm:$0xff]  ;;  %1496 = vst [vmem:[%s2067_s24 + $0x758] sm:$0xff] %v1240_v9  ;;  %v1243_v21 = vadd.f32 %v987_v11, %v474_v3  ;;  %v990_v23 = vmul.f32 %v2045_v2, %v733_v18  ;;  %v479_v25 = vld [vmem:[%s2029_s8 + $0x798] sm:$0xff]  ;;  %v480_v27 = vld [vmem:[%s2029_s8 + $0x7a0] sm:$0xff] }
 0x107   : > { %1497 = vst [vmem:[%s2067_s24 + $0x760] sm:$0xff] %v1241_v10  ;;  %v1244_v22 = vadd.f32 %v988_v12, %v475_v7  ;;  %v991_v24 = vmul.f32 %v2045_v2, %v734_v20  ;;  %v735_v26 = vld [vmem:[%s2037_s10 + $0x798] sm:$0xff]  ;;  %1498 = vst [vmem:[%s2067_s24 + $0x768] sm:$0xff] %v1242_v16  ;;  %v736_v30 = vld [vmem:[%s2037_s10 + $0x7a0] sm:$0xff] }
 0x108   : > { %v1245_v28 = vadd.f32 %v989_v17, %v476_v13  ;;  %v992_v29 = vmul.f32 %v2045_v2, %v735_v26  ;;  %v481_v31 = vld [vmem:[%s2029_s8 + $0x7a8] sm:$0xff]  ;;  %1499 = vst [vmem:[%s2067_s24 + $0x770] sm:$0xff] %v1243_v21  ;;  %v1246_v33 = vadd.f32 %v990_v23, %v477_v15  ;;  %v993_v35 = vmul.f32 %v2045_v2, %v736_v30  ;;  %v482_v37 = vld [vmem:[%s2029_s8 + $0x7b0] sm:$0xff]  ;;  %v483_v39 = vld [vmem:[%s2029_s8 + $0x7b8] sm:$0xff] }
 0x109   : > { %v737_v32 = vld [vmem:[%s2037_s10 + $0x7a8] sm:$0xff]  ;;  %1500 = vst [vmem:[%s2067_s24 + $0x778] sm:$0xff] %v1244_v22  ;;  %v1247_v34 = vadd.f32 %v991_v24, %v478_v19  ;;  %v738_v38 = vld [vmem:[%s2037_s10 + $0x7b0] sm:$0xff]  ;;  %v739_v42 = vld [vmem:[%s2037_s10 + $0x7b8] sm:$0xff] }
 0x10a   : > { %v994_v36 = vmul.f32 %v2045_v2, %v737_v32  ;;  %1501 = vst [vmem:[%s2067_s24 + $0x780] sm:$0xff] %v1245_v28  ;;  %v1248_v40 = vadd.f32 %v992_v29, %v479_v25  ;;  %v995_v41 = vmul.f32 %v2045_v2, %v738_v38  ;;  %v484_v43 = vld [vmem:[%s2029_s8 + $0x7c0] sm:$0xff]  ;;  %1502 = vst [vmem:[%s2067_s24 + $0x788] sm:$0xff] %v1246_v33  ;;  %v485_v49 = vld [vmem:[%s2029_s8 + $0x7c8] sm:$0xff] }
 0x10b   : > { %v740_v44 = vld [vmem:[%s2037_s10 + $0x7c0] sm:$0xff]  ;;  %1503 = vst [vmem:[%s2067_s24 + $0x790] sm:$0xff] %v1247_v34  ;;  %v1249_v45 = vadd.f32 %v993_v35, %v480_v27  ;;  %v996_v47 = vmul.f32 %v2045_v2, %v739_v42  ;;  %v741_v50 = vld [vmem:[%s2037_s10 + $0x7c8] sm:$0xff]  ;;  %v486_v51 = vld [vmem:[%s2029_s8 + $0x7d0] sm:$0xff] }
 0x10c   : > { %v1250_v46 = vadd.f32 %v994_v36, %v481_v31  ;;  %v997_v48 = vmul.f32 %v2045_v2, %v740_v44  ;;  %1504 = vst [vmem:[%s2067_s24 + $0x798] sm:$0xff] %v1248_v40  ;;  %v1251_v52 = vadd.f32 %v995_v41, %v482_v37  ;;  %v998_v53 = vmul.f32 %v2045_v2, %v741_v50  ;;  %v742_v54 = vld [vmem:[%s2037_s10 + $0x7d0] sm:$0xff]  ;;  %v487_v55 = vld [vmem:[%s2029_s8 + $0x7d8] sm:$0xff]  ;;  %v488_v61 = vld [vmem:[%s2029_s8 + $0x7e0] sm:$0xff] }
 0x10d   : > { %v743_v56 = vld [vmem:[%s2037_s10 + $0x7d8] sm:$0xff]  ;;  %1505 = vst [vmem:[%s2067_s24 + $0x7a0] sm:$0xff] %v1249_v45  ;;  %v1252_v57 = vadd.f32 %v996_v47, %v483_v39  ;;  %v999_v59 = vmul.f32 %v2045_v2, %v742_v54  ;;  %v744_v62 = vld [vmem:[%s2037_s10 + $0x7e0] sm:$0xff]  ;;  %v489_v63 = vld [vmem:[%s2029_s8 + $0x7e8] sm:$0xff] }
 0x10e   : > { %1506 = vst [vmem:[%s2067_s24 + $0x7a8] sm:$0xff] %v1250_v46  ;;  %v1253_v58 = vadd.f32 %v997_v48, %v484_v43  ;;  %v1000_v60 = vmul.f32 %v2045_v2, %v743_v56  ;;  %1507 = vst [vmem:[%s2067_s24 + $0x7b0] sm:$0xff] %v1251_v52  ;;  %v1254_v0 = vadd.f32 %v998_v53, %v485_v49  ;;  %v745_v3 = vld [vmem:[%s2037_s10 + $0x7e8] sm:$0xff]  ;;  %v490_v4 = vld [vmem:[%s2029_s8 + $0x7f0] sm:$0xff] }
 0x10f   : > { %v1001_v1 = vmul.f32 %v2045_v2, %v744_v62  ;;  %v746_v5 = vld [vmem:[%s2037_s10 + $0x7f0] sm:$0xff]  ;;  %1508 = vst [vmem:[%s2067_s24 + $0x7b8] sm:$0xff] %v1252_v57  ;;  %v1255_v6 = vadd.f32 %v999_v59, %v486_v51  ;;  %v1002_v8 = vmul.f32 %v2045_v2, %v745_v3  ;;  %v491_v10 = vld [vmem:[%s2029_s8 + $0x7f8] sm:$0xff] }
 0x110   : > { %1509 = vst [vmem:[%s2067_s24 + $0x7c0] sm:$0xff] %v1253_v58  ;;  %v1256_v7 = vadd.f32 %v1000_v60, %v487_v55  ;;  %v1003_v9 = vmul.f32 %v2045_v2, %v746_v5  ;;  %v747_v11 = vld [vmem:[%s2037_s10 + $0x7f8] sm:$0xff]  ;;  %1510 = vst [vmem:[%s2067_s24 + $0x7c8] sm:$0xff] %v1254_v0 }
 0x111   : > { %v1257_v12 = vadd.f32 %v1001_v1, %v488_v61  ;;  %v1004_v13 = vmul.f32 %v2045_v2, %v747_v11  ;;  %1511 = vst [vmem:[%s2067_s24 + $0x7d0] sm:$0xff] %v1255_v6  ;;  %v1258_v14 = vadd.f32 %v1002_v8, %v489_v63 }
 0x112   : > { %1512 = vst [vmem:[%s2067_s24 + $0x7d8] sm:$0xff] %v1256_v7  ;;  %v1259_v15 = vadd.f32 %v1003_v9, %v490_v4 }
 0x113   : > { %1513 = vst [vmem:[%s2067_s24 + $0x7e0] sm:$0xff] %v1257_v12  ;;  %v1260_v16 = vadd.f32 %v1004_v13, %v491_v10  ;;  %1514 = vst [vmem:[%s2067_s24 + $0x7e8] sm:$0xff] %v1258_v14 }
 0x114   : > { %1515 = vst [vmem:[%s2067_s24 + $0x7f0] sm:$0xff] %v1259_v15 }
 0x115   : > { %1516 = vst [vmem:[%s2067_s24 + $0x7f8] sm:$0xff] %v1260_v16 }
 0x116   : > { %1779 = shalt.err (!%p1776_p4)
}
 0x117   : > { %s1780_s12 = scalar_lea.hbm %s3073_s23, 32768  ;;  %s1784_s9 = scalar_lea.hbm %s3125_s3, 65536 }
 0x118   : > { %p1781_p9 = scmp.ne.s32.totalorder %s3073_s23, %s1780_s12  ;;  %p1785_p5 = scmp.lt.s32.totalorder %s3073_s23, %s3125_s3 }
 0x119   : > { %p1786_p8 = scmp.lt.s32.totalorder %s1784_s9, %s1780_s12 }
 0x11a   : > { %p1782_p11 = pnand %p1781_p9, %p3135_p1 }
 0x11b   : > { %p1787_p6 = por %p1786_p8, %p1785_p5 }
 0x11c   : > { %p1783_p3 = pneg %p1782_p11 }
 0x11e   : > { %p1788_p13 = pnand %p1787_p6, %p1783_p3 }
 0x120   : > { %1791 = shalt.err (!%p1788_p13)
}
 0x121   : > { %s1841_s10 = smov 512   ;;  %s1842_s11 = smov 32  }
 0x122   : > { %1659 = dma.vmem_to_hbm [thread:$0]  (%p3135_p1), %s3075_s21, 32768, %s3073_s23, %s1518_s28, %s1841_s10, %s1841_s10, %s1842_s11  }
 0x123 PF: > { %s1547_s24 = sand.u32 1, %s1822_s14   ;;  %p3136_p12 = scmp.ne.s32.totalorder %s3131_s26, 0 }
 0x124   : > { %p3137_p7 = scmp.ge.s32.totalorder %s1834_s17, 2  ;;  %s1548_s18 = scalar_lea.sflag [#allocation5], %s1547_s24 }
 0x126   : > { %p1669_p10 = pnand %p3137_p7, %p3136_p12 }
 0x128   : > { %p1670_p0 = pneg %p1669_p10 }
 0x12a   : > { %1817 = dma.done.wait (%p1670_p0), %s1548_s18, 32768  }
 0x12b   : > { %1819 = vsyncadd (%p1670_p0), %s1548_s18, 4294934528  ;;  %p20_p2 = scmp.ge.s32.totalorder %s1891_s19, 4   ;;  %s3138_s14 = smov %s1826_s15 }
 0x12c   : > { %s3139_s15 = smov %s1830_s16  ;;  %s3140_s16 = smov %s1903_s22 }
 0x12d   : > { %s3141_s17 = smov %s1891_s19  ;;  %22 = sbr.rel (!%p20_p2) target bundleno = 9 (0x9), region = 90 }
 0x132   :  { %1553 = vsyncpa [#allocation4], 1 }
 0x133   :  { %1555 = vsyncpa [#allocation4 + $0x1], 1 }
 0x134   :  { %1556 = vsyncpa [#allocation7], 1 }
 0x135   :  { %1558 = vsyncpa [#allocation7 + $0x1], 1 }
 0x136   :  { %1559 = vsyncpa [#allocation5], 1 }
 0x137   :  { %1561 = vsyncpa [#allocation5 + $0x1], 1 }

</bundles_post_ra>
